<compile_context>
chip_gen: v7x
topology: tpu7x:2x2x1
jax: 0.10.0
libtpu: 0.0.40
codegen_flags: <defaults>
</compile_context>

<pallas_src>
import functools

import jax
import jax.numpy as jnp
import numpy as np
from jax import lax
from jax.experimental import pallas as pl
from jax.experimental.pallas import tpu as pltpu


def _bottleneck_kernel(x_ref, w1_ref, w2_ref, w3_ref, o_ref):
    # x_ref : (1, H, W, Cin)   bf16  full (unpadded) input image
    # w1_ref: (Cin, P)         bf16  conv1 1x1 weight
    # w2_ref: (3, 3P, P)       bf16  conv2 3x3 weight, [ky] blocks with rows (kx, ci)
    # w3_ref: (P, Cout)        bf16  conv3 1x1 weight
    # o_ref : (1, TH, W, Cout) bf16  output row tile
    _, TH, W, Cout = o_ref.shape
    H = x_ref.shape[1]
    Cin = x_ref.shape[-1]
    P = w1_ref.shape[1]

    t = pl.program_id(1)
    nt = pl.num_programs(1)
    row0 = pl.multiple_of(t * TH, TH)

    # ---- build TH+2 input rows: center tile + one halo row above/below ----
    # Halo rows come from clamped dynamic reads of the VMEM-resident image and are
    # zeroed at the image border with a scalar scale (replaces wrapper jnp.pad).
    center = x_ref[0, pl.ds(row0, TH), :, :]                        # (TH, W, Cin) bf16
    top_idx = jnp.maximum(row0 - 1, 0)
    bot_idx = jnp.minimum(row0 + TH, H - 1)
    top_scale = jnp.minimum(t, 1).astype(jnp.float32)               # 0.0 iff first tile
    bot_scale = jnp.minimum(nt - 1 - t, 1).astype(jnp.float32)      # 0.0 iff last tile
    top = (x_ref[0, pl.ds(top_idx, 1), :, :].astype(jnp.float32) * top_scale
           ).astype(jnp.bfloat16)                                   # (1, W, Cin)
    bot = (x_ref[0, pl.ds(bot_idx, 1), :, :].astype(jnp.float32) * bot_scale
           ).astype(jnp.bfloat16)                                   # (1, W, Cin)
    xs = jnp.concatenate([top, center, bot], axis=0)                # (TH+2, W, Cin) bf16

    # ---- conv1: 1x1 -> channel matmul + ReLU (f32 accumulate) ----
    h1 = jnp.dot(xs.reshape((TH + 2) * W, Cin), w1_ref[...],
                 preferred_element_type=jnp.float32)
    h1 = jnp.maximum(h1, 0.0).reshape(TH + 2, W, P)                 # f32
    h1b = h1.astype(jnp.bfloat16)                                   # center tap, bf16

    # ---- conv2: 3x3 as 3 accumulated K=3P matmuls (one per ky tap) ----
    # W-shifts via XLU roll (f32, proven lowering) + small (1, W, P) boundary mask;
    # the concatenated taps and all matmul operands are bf16.
    col = lax.broadcasted_iota(jnp.int32, (1, W, P), 1)
    left = jnp.where(col == 0, 0.0,
                     pltpu.roll(h1, shift=1, axis=1)).astype(jnp.bfloat16)        # x-1
    right = jnp.where(col == W - 1, 0.0,
                      pltpu.roll(h1, shift=W - 1, axis=1)).astype(jnp.bfloat16)   # x+1
    cols = jnp.concatenate([left, h1b, right], axis=-1)             # (TH+2, W, 3P) bf16

    h2 = jnp.dot(cols[0:TH].reshape(TH * W, 3 * P), w2_ref[0],      # ky = 0 (row y-1)
                 preferred_element_type=jnp.float32)
    h2 += jnp.dot(cols[1:TH + 1].reshape(TH * W, 3 * P), w2_ref[1], # ky = 1 (row y)
                  preferred_element_type=jnp.float32)
    h2 += jnp.dot(cols[2:TH + 2].reshape(TH * W, 3 * P), w2_ref[2], # ky = 2 (row y+1)
                  preferred_element_type=jnp.float32)
    h2 = jnp.maximum(h2, 0.0)                                       # (TH*W, P) f32

    # ---- conv3: 1x1 + residual add + ReLU (f32), store bf16 ----
    # TODO(synk): residual uses the bf16-quantized input (PyTorch skip is f32);
    # feed an f32 copy of x if that quantization ever matters.
    residual = center.reshape(TH * W, Cin).astype(jnp.float32)
    out = jnp.dot(h2.astype(jnp.bfloat16), w3_ref[...],
                  preferred_element_type=jnp.float32) + residual
    out = jnp.maximum(out, 0.0)
    o_ref[0] = out.reshape(TH, W, Cout).astype(o_ref.dtype)


def _vmem_limit_bytes():
    """Generation-aware VMEM limit: ~3/4 of physical per-core VMEM, capped at 112 MiB."""
    try:
        cap = int(pltpu.get_tpu_info().vmem_capacity_bytes)
        if cap <= 0:
            raise ValueError
    except Exception:
        return 48 * 1024 * 1024                     # conservative: fits every generation
    return int(min((cap * 3) // 4, 112 * 1024 * 1024))


def _pick_row_tile(H, W, Cin, P, Cout, budget_bytes, max_row_tile=None):
    """Largest divisor of H whose rough per-step VMEM working set fits the budget."""
    bf16, f32 = 2, 4
    # Pipeline-resident blocks: double-buffered full image + weights.
    fixed = 2 * H * W * Cin * bf16 + 2 * (Cin * P + 9 * P * P + P * Cout) * bf16
    best = 1
    cap = H if max_row_tile is None else max(1, min(H, max_row_tile))
    for th in range(1, cap + 1):
        if H % th:
            continue
        out_blk = 2 * th * W * Cout * bf16
        inter = ((th + 2) * W * (Cin * bf16 + P * (f32 + bf16) + 2 * 3 * P * bf16)
                 + th * W * (3 * 3 * P * bf16 + P * f32 + Cout * f32 + Cin * f32))
        if fixed + out_blk + inter <= budget_bytes:
            best = th
    return best


def _prepare_weights(w1_oihw, w2_oihw, w3_oihw):
    P = w1_oihw.shape[0]
    # OIHW 1x1 -> (Cin, P); OIHW 3x3 -> (kh, kw, Cin, Cout) -> (3, 3*Cin, Cout).
    w1 = jnp.transpose(w1_oihw[:, :, 0, 0], (1, 0)).astype(jnp.bfloat16)
    w2 = jnp.transpose(w2_oihw, (2, 3, 1, 0)).reshape(3, 3 * P, P).astype(jnp.bfloat16)
    w3 = jnp.transpose(w3_oihw[:, :, 0, 0], (1, 0)).astype(jnp.bfloat16)
    return w1, w2, w3


def bottleneck_forward_nhwc(x_nhwc, w1_oihw, w2_oihw, w3_oihw, *, max_row_tile=None):
    """Fused Bottleneck forward on NHWC activations. Returns NHWC bf16."""
    N, H, W, Cin = x_nhwc.shape
    P = w1_oihw.shape[0]
    Cout = w3_oihw.shape[0]
    assert Cout == 4 * P and Cin == Cout, "residual path requires inplanes == 4*planes"
    # NOTE: MXU result width caps utilization at min(P, 256)/256 on v6e/v7x
    # (min(P, 128)/128 on v5e); P >= 128 is needed to fill it — that is a model
    # configuration ceiling, not something tiling can recover.

    vmem_limit = _vmem_limit_bytes()
    TH = _pick_row_tile(H, W, Cin, P, Cout, (vmem_limit * 3) // 5, max_row_tile)
    NT = H // TH

    x = x_nhwc.astype(jnp.bfloat16)
    w1, w2, w3 = _prepare_weights(w1_oihw, w2_oihw, w3_oihw)

    return pl.pallas_call(
        _bottleneck_kernel,
        out_shape=jax.ShapeDtypeStruct((N, H, W, Cout), jnp.bfloat16),
        grid_spec=pltpu.PrefetchScalarGridSpec(
            num_scalar_prefetch=0,
            grid=(N, NT),
            in_specs=[
                # Full image: constant block index over the row-tile axis, so it is
                # DMA'd once per batch element and the +/-1-row halo windows are
                # sliced directly in VMEM.
                pl.BlockSpec((1, H, W, Cin), lambda n, t: (n, 0, 0, 0)),
                # Weights: constant index maps -> fetched once.
                # TODO(synk): on v7x, pipeline_mode=pl.Buffered(1) on these specs
                # would halve their (already small) double-buffered VMEM footprint.
                pl.BlockSpec((Cin, P), lambda n, t: (0, 0)),
                pl.BlockSpec((3, 3 * P, P), lambda n, t: (0, 0, 0)),
                pl.BlockSpec((P, Cout), lambda n, t: (0, 0)),
            ],
            out_specs=pl.BlockSpec((1, TH, W, Cout), lambda n, t: (n, t, 0, 0)),
        ),
        compiler_params=pltpu.CompilerParams(
            dimension_semantics=("parallel", "parallel"),
            vmem_limit_bytes=vmem_limit,
        ),
    )(x, w1, w2, w3)


def bottleneck_forward(x_nchw, w1_oihw, w2_oihw, w3_oihw, *, max_row_tile=None):
    """PyTorch-layout (NCHW) wrapper; returns NCHW bf16.

    Prefer bottleneck_forward_nhwc end-to-end — each transpose here is an extra
    HBM pass over the activations.
    """
    x = jnp.transpose(x_nchw, (0, 2, 3, 1))
    out = bottleneck_forward_nhwc(x, w1_oihw, w2_oihw, w3_oihw, max_row_tile=max_row_tile)
    return jnp.transpose(out, (0, 3, 1, 2))


def reference_bottleneck(x, w1, w2, w3):
    """Pure-JAX f32 NCHW reference mirroring the PyTorch forward (downsample=None)."""
    dn = ("NCHW", "OIHW", "NCHW")
    conv = functools.partial(
        lax.conv_general_dilated,
        window_strides=(1, 1),
        dimension_numbers=dn,
        precision=lax.Precision.HIGHEST,
    )
    out = jax.nn.relu(conv(x, w1, padding="VALID"))
    out = jax.nn.relu(conv(out, w2, padding=[(1, 1), (1, 1)]))
    out = conv(out, w3, padding="VALID")
    return jax.nn.relu(out + x)


if __name__ == "__main__":
    key = jax.random.PRNGKey(0)
    N, H, W = 2, 16, 16
    planes = 32                 # Cout = 128 -> lane-dense output stores
    inplanes = planes * 4       # expansion = 4; required for downsample=None

    kx, k1, k2, k3 = jax.random.split(key, 4)
    x = jax.random.normal(kx, (N, inplanes, H, W), jnp.float32)
    # Deterministic synthetic weights in PyTorch OIHW layout (bias=False everywhere).
    w1 = 0.1 * jax.random.normal(k1, (planes, inplanes, 1, 1), jnp.float32)
    w2 = 0.1 * jax.random.normal(k2, (planes, planes, 3, 3), jnp.float32)
    w3 = 0.1 * jax.random.normal(k3, (planes * 4, planes, 1, 1), jnp.float32)

    out = jax.block_until_ready(bottleneck_forward(x, w1, w2, w3))
    ref = jax.block_until_ready(reference_bottleneck(x, w1, w2, w3))
    # Tolerance reflects deliberate bf16 activation/weight/output quantization
    # (MXU path); accumulation is f32 inside the kernel.
    np.testing.assert_allclose(np.asarray(out.astype(jnp.float32)), np.asarray(ref),
                               rtol=2e-2, atol=4e-2)

    print("KERNEL_OK")
</pallas_src>

<mosaic_0001>
module attributes {stable_mosaic.version = 11 : i64} {
  func.func @_bottleneck_kernel(%arg0: i32, %arg1: i32, %arg2: memref<1x16x16x128xbf16, #tpu.memory_space<vmem>>, %arg3: memref<128x32xbf16, #tpu.memory_space<vmem>>, %arg4: memref<3x96x32xbf16, #tpu.memory_space<vmem>>, %arg5: memref<32x128xbf16, #tpu.memory_space<vmem>>, %arg6: memref<1x16x16x128xbf16, #tpu.memory_space<vmem>>) attributes {dimension_semantics = [#tpu.dimension_semantics<parallel>, #tpu.dimension_semantics<parallel>], iteration_bounds = array<i64: 2, 1>, scalar_prefetch = 0 : i64, scratch_operands = 0 : i64, tpu.core_type = #tpu.core_type<tc>, window_params = [{transform_indices = @transform_0, window_bounds = array<i64: 1, 16, 16, 128>}, {pipeline_mode = #tpu.pipeline_mode<synchronous>, transform_indices = @transform_1, window_bounds = array<i64: 128, 32>}, {pipeline_mode = #tpu.pipeline_mode<synchronous>, transform_indices = @transform_2, window_bounds = array<i64: 3, 96, 32>}, {pipeline_mode = #tpu.pipeline_mode<synchronous>, transform_indices = @transform_3, window_bounds = array<i64: 32, 128>}, {transform_indices = @transform_4, window_bounds = array<i64: 1, 16, 16, 128>}]} {
    %c16_i32 = arith.constant 16 : i32
    %0 = arith.muli %arg1, %c16_i32 : i32
    %1 = tpu.assume_multiple %0, 16 : i32
    %c0 = arith.constant 0 : index
    %2 = arith.index_cast %1 : i32 to index
    %c0_0 = arith.constant 0 : index
    %c0_1 = arith.constant 0 : index
    %3 = vector.load %arg2[%c0, %2, %c0_0, %c0_1] : memref<1x16x16x128xbf16, #tpu.memory_space<vmem>>, vector<1x16x16x128xbf16>
    %4 = vector.shape_cast %3 : vector<1x16x16x128xbf16> to vector<16x16x128xbf16>
    %c1_i32 = arith.constant 1 : i32
    %5 = arith.subi %1, %c1_i32 : i32
    %c0_i32 = arith.constant 0 : i32
    %6 = arith.maxsi %5, %c0_i32 : i32
    %c16_i32_2 = arith.constant 16 : i32
    %7 = arith.addi %1, %c16_i32_2 : i32
    %c15_i32 = arith.constant 15 : i32
    %8 = arith.minsi %7, %c15_i32 : i32
    %c1_i32_3 = arith.constant 1 : i32
    %9 = arith.minsi %arg1, %c1_i32_3 : i32
    %10 = arith.sitofp %9 : i32 to f32
    %c0_i32_4 = arith.constant 0 : i32
    %11 = arith.subi %c0_i32_4, %arg1 : i32
    %c1_i32_5 = arith.constant 1 : i32
    %12 = arith.minsi %11, %c1_i32_5 : i32
    %13 = arith.sitofp %12 : i32 to f32
    %c0_6 = arith.constant 0 : index
    %14 = arith.index_cast %6 : i32 to index
    %c0_7 = arith.constant 0 : index
    %c0_8 = arith.constant 0 : index
    %15 = vector.load %arg2[%c0_6, %14, %c0_7, %c0_8] : memref<1x16x16x128xbf16, #tpu.memory_space<vmem>>, vector<1x1x16x128xbf16>
    %16 = vector.shape_cast %15 : vector<1x1x16x128xbf16> to vector<1x16x128xbf16>
    %17 = arith.extf %16 : vector<1x16x128xbf16> to vector<1x16x128xf32>
    %18 = vector.broadcast %10 : f32 to vector<1x16x128xf32>
    %19 = arith.mulf %17, %18 : vector<1x16x128xf32>
    %20 = arith.truncf %19 : vector<1x16x128xf32> to vector<1x16x128xbf16>
    %c0_9 = arith.constant 0 : index
    %21 = arith.index_cast %8 : i32 to index
    %c0_10 = arith.constant 0 : index
    %c0_11 = arith.constant 0 : index
    %22 = vector.load %arg2[%c0_9, %21, %c0_10, %c0_11] : memref<1x16x16x128xbf16, #tpu.memory_space<vmem>>, vector<1x1x16x128xbf16>
    %23 = vector.shape_cast %22 : vector<1x1x16x128xbf16> to vector<1x16x128xbf16>
    %24 = arith.extf %23 : vector<1x16x128xbf16> to vector<1x16x128xf32>
    %25 = vector.broadcast %13 : f32 to vector<1x16x128xf32>
    %26 = arith.mulf %24, %25 : vector<1x16x128xf32>
    %27 = arith.truncf %26 : vector<1x16x128xf32> to vector<1x16x128xbf16>
    %28 = tpu.concatenate %20, %4, %27 in 0 : vector<1x16x128xbf16>, vector<16x16x128xbf16>, vector<1x16x128xbf16> -> vector<18x16x128xbf16>
    %29 = vector.shape_cast %28 : vector<18x16x128xbf16> to vector<288x128xbf16>
    %c0_12 = arith.constant 0 : index
    %c0_13 = arith.constant 0 : index
    %30 = vector.load %arg3[%c0_12, %c0_13] : memref<128x32xbf16, #tpu.memory_space<vmem>>, vector<128x32xbf16>
    %cst = arith.constant dense<0.000000e+00> : vector<288x32xf32>
    %31 = tpu.matmul %29, %30, %cst {dimension_numbers = #tpu.dot_dimension_numbers<[1], [0], [0], [1], [0, 0, 1, 1], [], []>} : vector<288x128xbf16>, vector<128x32xbf16>, vector<288x32xf32> -> vector<288x32xf32>
    %cst_14 = arith.constant 0.000000e+00 : f32
    %32 = vector.broadcast %cst_14 : f32 to vector<288x32xf32>
    %33 = arith.maximumf %31, %32 : vector<288x32xf32>
    %34 = vector.shape_cast %33 : vector<288x32xf32> to vector<18x16x32xf32>
    %35 = arith.truncf %34 : vector<18x16x32xf32> to vector<18x16x32xbf16>
    %36 = tpu.iota {dimensions = array<i32: 1>} : vector<1x16x32xi32>
    %c0_i32_15 = arith.constant 0 : i32
    %37 = vector.broadcast %c0_i32_15 : i32 to vector<1x16x32xi32>
    %38 = arith.cmpi eq, %36, %37 : vector<1x16x32xi32>
    %c1_i32_16 = arith.constant 1 : i32
    %39 = tpu.dynamic_rotate %34 by %c1_i32_16 dim 1 : vector<18x16x32xf32>, i32 -> vector<18x16x32xf32>
    %cst_17 = arith.constant 0.000000e+00 : f32
    %40 = vector.shape_cast %38 : vector<1x16x32xi1> to vector<1x16x32xi1>
    %41 = vector.broadcast %40 : vector<1x16x32xi1> to vector<18x16x32xi1>
    %42 = vector.broadcast %cst_17 : f32 to vector<18x16x32xf32>
    %43 = arith.select %41, %42, %39 : vector<18x16x32xi1>, vector<18x16x32xf32>
    %44 = arith.truncf %43 : vector<18x16x32xf32> to vector<18x16x32xbf16>
    %c15_i32_18 = arith.constant 15 : i32
    %45 = vector.broadcast %c15_i32_18 : i32 to vector<1x16x32xi32>
    %46 = arith.cmpi eq, %36, %45 : vector<1x16x32xi32>
    %c15_i32_19 = arith.constant 15 : i32
    %47 = tpu.dynamic_rotate %34 by %c15_i32_19 dim 1 : vector<18x16x32xf32>, i32 -> vector<18x16x32xf32>
    %cst_20 = arith.constant 0.000000e+00 : f32
    %48 = vector.shape_cast %46 : vector<1x16x32xi1> to vector<1x16x32xi1>
    %49 = vector.broadcast %48 : vector<1x16x32xi1> to vector<18x16x32xi1>
    %50 = vector.broadcast %cst_20 : f32 to vector<18x16x32xf32>
    %51 = arith.select %49, %50, %47 : vector<18x16x32xi1>, vector<18x16x32xf32>
    %52 = arith.truncf %51 : vector<18x16x32xf32> to vector<18x16x32xbf16>
    %53 = tpu.concatenate %44, %35, %52 in 2 : vector<18x16x32xbf16>, vector<18x16x32xbf16>, vector<18x16x32xbf16> -> vector<18x16x96xbf16>
    %54 = vector.extract_strided_slice %53 {offsets = [0, 0, 0], sizes = [16, 16, 96], strides = [1, 1, 1]} : vector<18x16x96xbf16> to vector<16x16x96xbf16>
    %55 = vector.shape_cast %54 : vector<16x16x96xbf16> to vector<256x96xbf16>
    %c0_21 = arith.constant 0 : index
    %c0_22 = arith.constant 0 : index
    %c0_23 = arith.constant 0 : index
    %56 = vector.load %arg4[%c0_21, %c0_22, %c0_23] : memref<3x96x32xbf16, #tpu.memory_space<vmem>>, vector<1x96x32xbf16>
    %57 = vector.shape_cast %56 : vector<1x96x32xbf16> to vector<96x32xbf16>
    %cst_24 = arith.constant dense<0.000000e+00> : vector<256x32xf32>
    %58 = tpu.matmul %55, %57, %cst_24 {dimension_numbers = #tpu.dot_dimension_numbers<[1], [0], [0], [1], [0, 0, 1, 1], [], []>} : vector<256x96xbf16>, vector<96x32xbf16>, vector<256x32xf32> -> vector<256x32xf32>
    %59 = vector.extract_strided_slice %53 {offsets = [1, 0, 0], sizes = [16, 16, 96], strides = [1, 1, 1]} : vector<18x16x96xbf16> to vector<16x16x96xbf16>
    %60 = vector.shape_cast %59 : vector<16x16x96xbf16> to vector<256x96xbf16>
    %c1 = arith.constant 1 : index
    %c0_25 = arith.constant 0 : index
    %c0_26 = arith.constant 0 : index
    %61 = vector.load %arg4[%c1, %c0_25, %c0_26] : memref<3x96x32xbf16, #tpu.memory_space<vmem>>, vector<1x96x32xbf16>
    %62 = vector.shape_cast %61 : vector<1x96x32xbf16> to vector<96x32xbf16>
    %cst_27 = arith.constant dense<0.000000e+00> : vector<256x32xf32>
    %63 = tpu.matmul %60, %62, %cst_27 {dimension_numbers = #tpu.dot_dimension_numbers<[1], [0], [0], [1], [0, 0, 1, 1], [], []>} : vector<256x96xbf16>, vector<96x32xbf16>, vector<256x32xf32> -> vector<256x32xf32>
    %64 = arith.addf %58, %63 : vector<256x32xf32>
    %65 = vector.extract_strided_slice %53 {offsets = [2, 0, 0], sizes = [16, 16, 96], strides = [1, 1, 1]} : vector<18x16x96xbf16> to vector<16x16x96xbf16>
    %66 = vector.shape_cast %65 : vector<16x16x96xbf16> to vector<256x96xbf16>
    %c2 = arith.constant 2 : index
    %c0_28 = arith.constant 0 : index
    %c0_29 = arith.constant 0 : index
    %67 = vector.load %arg4[%c2, %c0_28, %c0_29] : memref<3x96x32xbf16, #tpu.memory_space<vmem>>, vector<1x96x32xbf16>
    %68 = vector.shape_cast %67 : vector<1x96x32xbf16> to vector<96x32xbf16>
    %cst_30 = arith.constant dense<0.000000e+00> : vector<256x32xf32>
    %69 = tpu.matmul %66, %68, %cst_30 {dimension_numbers = #tpu.dot_dimension_numbers<[1], [0], [0], [1], [0, 0, 1, 1], [], []>} : vector<256x96xbf16>, vector<96x32xbf16>, vector<256x32xf32> -> vector<256x32xf32>
    %70 = arith.addf %64, %69 : vector<256x32xf32>
    %cst_31 = arith.constant 0.000000e+00 : f32
    %71 = vector.broadcast %cst_31 : f32 to vector<256x32xf32>
    %72 = arith.maximumf %70, %71 : vector<256x32xf32>
    %73 = vector.shape_cast %4 : vector<16x16x128xbf16> to vector<256x128xbf16>
    %74 = arith.extf %73 : vector<256x128xbf16> to vector<256x128xf32>
    %75 = arith.truncf %72 : vector<256x32xf32> to vector<256x32xbf16>
    %c0_32 = arith.constant 0 : index
    %c0_33 = arith.constant 0 : index
    %76 = vector.load %arg5[%c0_32, %c0_33] : memref<32x128xbf16, #tpu.memory_space<vmem>>, vector<32x128xbf16>
    %cst_34 = arith.constant dense<0.000000e+00> : vector<256x128xf32>
    %77 = tpu.matmul %75, %76, %cst_34 {dimension_numbers = #tpu.dot_dimension_numbers<[1], [0], [0], [1], [0, 0, 1, 1], [], []>} : vector<256x32xbf16>, vector<32x128xbf16>, vector<256x128xf32> -> vector<256x128xf32>
    %78 = arith.addf %77, %74 : vector<256x128xf32>
    %cst_35 = arith.constant 0.000000e+00 : f32
    %79 = vector.broadcast %cst_35 : f32 to vector<256x128xf32>
    %80 = arith.maximumf %78, %79 : vector<256x128xf32>
    %81 = vector.shape_cast %80 : vector<256x128xf32> to vector<16x16x128xf32>
    %82 = arith.truncf %81 : vector<16x16x128xf32> to vector<16x16x128xbf16>
    %c0_36 = arith.constant 0 : index
    %c0_37 = arith.constant 0 : index
    %c0_38 = arith.constant 0 : index
    %c0_39 = arith.constant 0 : index
    %83 = vector.load %arg6[%c0_36, %c0_37, %c0_38, %c0_39] : memref<1x16x16x128xbf16, #tpu.memory_space<vmem>>, vector<1x16x16x128xbf16>
    %84 = vector.shape_cast %83 : vector<1x16x16x128xbf16> to vector<16x16x128xbf16>
    %85 = vector.shape_cast %82 : vector<16x16x128xbf16> to vector<1x16x16x128xbf16>
    tpu.vector_store %arg6[%c0_36, %c0_37, %c0_38, %c0_39], %85 {strides = array<i32>} : memref<1x16x16x128xbf16, #tpu.memory_space<vmem>>, vector<1x16x16x128xbf16>,
    return
  }
  func.func @transform_0(%arg0: i32, %arg1: i32) -> (i32, i32, i32, i32) {
    %c0_i32 = arith.constant 0 : i32
    %c0_i32_0 = arith.constant 0 : i32
    %c0_i32_1 = arith.constant 0 : i32
    %c0_i32_2 = arith.constant 0 : i32
    return %arg0, %c0_i32, %c0_i32_0, %c0_i32_1 : i32, i32, i32, i32
  }
  func.func @transform_1(%arg0: i32, %arg1: i32) -> (i32, i32) {
    %c0_i32 = arith.constant 0 : i32
    %c0_i32_0 = arith.constant 0 : i32
    %c0_i32_1 = arith.constant 0 : i32
    return %c0_i32, %c0_i32_0 : i32, i32
  }
  func.func @transform_2(%arg0: i32, %arg1: i32) -> (i32, i32, i32) {
    %c0_i32 = arith.constant 0 : i32
    %c0_i32_0 = arith.constant 0 : i32
    %c0_i32_1 = arith.constant 0 : i32
    %c0_i32_2 = arith.constant 0 : i32
    return %c0_i32, %c0_i32_0, %c0_i32_1 : i32, i32, i32
  }
  func.func @transform_3(%arg0: i32, %arg1: i32) -> (i32, i32) {
    %c0_i32 = arith.constant 0 : i32
    %c0_i32_0 = arith.constant 0 : i32
    %c0_i32_1 = arith.constant 0 : i32
    return %c0_i32, %c0_i32_0 : i32, i32
  }
  func.func @transform_4(%arg0: i32, %arg1: i32) -> (i32, i32, i32, i32) {
    %c0_i32 = arith.constant 0 : i32
    %c0_i32_0 = arith.constant 0 : i32
    %c0_i32_1 = arith.constant 0 : i32
    return %arg0, %arg1, %c0_i32, %c0_i32_0 : i32, i32, i32, i32
  }
}

</mosaic_0001>

<bundles_post_ra>
// kernel: tpu_custom_call.1
= control target key start
LH: loop header
LB: loop body
LE: loop exit
PB: predicated region body
PF: predicated region fallthrough
CT: control target
= control target key end

     0   :  { %9 = vsyncpa [#allocation3], 0  ;;  %s4390_s0 = inlined_call_operand.vmem [shape: bf16[2,16,16,128], index: 0, kind: input, shape index: {}]   ;;  %s4391_s1 = inlined_call_operand.vmem [shape: bf16[128,32], index: 1, kind: input, shape index: {}]   ;;  %s4392_s2 = inlined_call_operand.vmem [shape: bf16[3,96,32], index: 2, kind: input, shape index: {}]   ;;  %s4393_s3 = inlined_call_operand.vmem [shape: bf16[32,128], index: 3, kind: input, shape index: {}]   ;;  %s4394_s4 = inlined_call_operand.hbm [shape: bf16[2,16,16,128], index: 4, kind: output, shape index: {}]  }
   0x1   :  { %11 = vsyncpa [#allocation3 + $0x1], 0  ;;  %s3400_s15 = smov 0   ;;  %s3402_s16 = smov 0  }
   0x2   :  { %s3404_s17 = smov 0   ;;  %s3406_s18 = smov 0  }
   0x3   :  { %s3408_s19 = smov 0   ;;  %s3410_s20 = smov 0  }
   0x4 LB: > { %s2434_s21 = sadd.s32 4294967295, %s3369_s20   ;;  %s2435_s22 = sadd.s32 4294967294, %s3369_s20   ;;  %s3369_s20 = sphi %s3410_s20, %s17_s20   ;;  %s3365_s19 = sphi %s3408_s19, %s4487_s19   ;;  %s3361_s18 = sphi %s3406_s18, %s4486_s18   ;;  %s3357_s17 = sphi %s3404_s17, %s4485_s17   ;;  %s3353_s16 = sphi %s3402_s16, %s4484_s16   ;;  %s3349_s15 = sphi %s3400_s15, %s4483_s15  }
   0x5   : > { %s29_s23 = sadd.s32 1, %s3365_s19  ;;  %s127_s24 = sadd.s32 1, %s3357_s17 }
   0x6   : > { %p31_p0 = scmp.ge.s32.totalorder %s29_s23, 2  ;;  %p137_p1 = scmp.ne.s32.totalorder %s3357_s17, %s3353_s16 }
   0x7   : > { %p138_p2 = scmp.eq.s32.totalorder %s2434_s21, 1  ;;  %p143_p3 = scmp.ne.s32.totalorder %s3353_s16, %s3349_s15 }
   0x8   : > { %s4489_s23 = smov (%p31_p0, %s29_s23), 0  ;;  %p144_p5 = scmp.eq.s32.totalorder %s2435_s22, 1 }
   0x9   : > { %p3440_p4 = por %p138_p2, %p137_p1  ;;  %s122_s26 = ssub.s32 %s3365_s19, %s4489_s23 }
   0xa   : > { %p2438_p6 = scmp.ge.s32.totalorder %s3369_s20, 1  ;;  %p125_p7 = scmp.eq.s32.totalorder %s122_s26, 0 }
   0xb   : > { %p3447_p8 = por %p144_p5, %p143_p3  ;;  %p179_p9 = scmp.lt.s32.totalorder %s3369_s20, 3 }
   0xc   : > { %s3453_s28 = scalar_select %p125_p7, %s3357_s17, %s127_s24  }
   0xd   : > { %p180_p10 = pnand %p2438_p6, %p179_p9 }
   0xf   : > { %183 = sbr.rel (%p180_p10) target bundleno = 1044 (0x414), region = 36 }
  0x16   : > { %v3215_v0 = vld [vmem:[%s4391_s1] sm:$0xff]   ;;  %p205_p11 = scmp.lt.s32.totalorder %s3361_s18, 1  ;;  %v3216_v1 = vld [vmem:[%s4391_s1 + $0x8] sm:$0xff]   ;;  %v3217_v2 = vld [vmem:[%s4391_s1 + $0x10] sm:$0xff]   ;;  %v674_v39 = vlaneseq  ;;  %s3371_s5 = smov 32   ;;  %vm1051_vm4 = vcmask 261120  }
  0x17   : > { %2861 = vmatprep.subr.bf16.mxu0 %v3215_v0  ;;  %v3218_v3 = vld [vmem:[%s4391_s1 + $0x18] sm:$0xff]   ;;  %v3219_v9 = vld [vmem:[%s4391_s1 + $0x20] sm:$0xff]   ;;  %v3220_v11 = vld [vmem:[%s4391_s1 + $0x28] sm:$0xff]   ;;  %s3372_s8 = smov 64   ;;  %vm1106_vm5 = vcmask 523264   ;;  %vm1204_vm6 = vcmask 785408  }
  0x18   : > { %s206_s7 = scalar_select %p205_p11, %s3361_s18, 1  ;;  %2862 = vmatpush3.bf16.msra.mxu0 %v3215_v0  ;;  %v3221_v12 = vld [vmem:[%s4391_s1 + $0x30] sm:$0xff]   ;;  %v3222_v13 = vld [vmem:[%s4391_s1 + $0x38] sm:$0xff]   ;;  %v3241_v38 = vld [vmem:[%s4392_s2 + $0x40] sm:$0xff]   ;;  %v3513_v40 = vshrl.u32 %v674_v39, 7 }
  0x19   : > { %2863 = vmatprep.subr.bf16.mxu0 %v3216_v1  ;;  %v3239_v36 = vld [vmem:[%s4392_s2 + $0x30] sm:$0xff]   ;;  %v3240_v37 = vld [vmem:[%s4392_s2 + $0x38] sm:$0xff]   ;;  %s202_s6 = sand.u32 1, %s3353_s16   ;;  %s3373_s22 = smov [#allocation2]  }
  0x1a   : > { %s2613_s10 = sshll.u32 %s206_s7, 7  ;;  %3081 = vmatprep.subr.bf16.mxu1 %v3239_v36  ;;  %v3516_v41 = vadd.s32 8, %v3513_v40  ;;  %vm715_vm0 = vcmp.lt.s32.totalorder %v3513_v40, 1  ;;  %vm848_vm2 = vcmp.lt.s32.totalorder %v3513_v40, 7  ;;  %vm677_vm3 = vcmp.eq.s32.totalorder %v3513_v40, 0  ;;  %s2439_s7 = sshll.u32 %s202_s6, 7 }
  0x1b   : > { %s3469_s13 = scalar_lea.vmem %s4390_s0, %s2613_s10  ;;  %3087 = vmatpush3.bf16.msra.mxu1 %v3239_v36  ;;  %s4301_s9 = scalar_lea.vmem [#allocation2], %s2439_s7 }
  0x1c   : > { %2864 = vmatpush3.bf16.msra.mxu0 %v3216_v1  ;;  %v2648_v4 = vld [vmem:[%s3469_s13] sm:$0xff]   ;;  %v218_v15 = vld [vmem:[%s3469_s13 + $0x8] sm:$0xff]   ;;  %v220_v16 = vld [vmem:[%s3469_s13 + $0x10] sm:$0xff]   ;;  %3082 = vmatprep.subr.bf16.mxu1 %v3240_v37  ;;  %vm811_vm1 = vcmp.eq.s32.totalorder %v3516_v41, 15  ;;  %s2355_s10 = sshll.u32 %s4301_s9, 4  ;;  %s3295_s24 = sshll.u32 %s3373_s22, 4  ;;  %s4336_s10 = int_to_ptr.vmem [resolvable:$true] %s2355_s10  ;;  %s3296_s24 = int_to_ptr.vmem [resolvable:$false] %s3295_s24 }
  0x1d   : > { %2865 = vmatprep.subr.bf16.mxu0 %v3217_v2  ;;  %v2649_v5 = vunpack.c.l.bf16 %v2648_v4  ;;  %v2650_v6 = vunpack.c.h.bf16 %v2648_v4  ;;  %v216_v14 = vld [vmem:[%s3469_s13] sm:$0xff]   ;;  %v222_v17 = vld [vmem:[%s3469_s13 + $0x18] sm:$0xff]   ;;  %v226_v19 = vld [vmem:[%s3469_s13 + $0x28] sm:$0xff]   ;;  %s3291_s21 = scalar_lea.vmem %s4336_s10, 2048  ;;  %s3297_s26 = scalar_lea.vmem %s3296_s24, 4096 }
  0x1e   : > { %v224_v18 = vld [vmem:[%s3469_s13 + $0x20] sm:$0xff]   ;;  %v228_v20 = vld [vmem:[%s3469_s13 + $0x30] sm:$0xff]   ;;  %v230_v21 = vld [vmem:[%s3469_s13 + $0x38] sm:$0xff]   ;;  %p3292_p12 = scmp.ne.s32.totalorder %s4336_s10, %s3291_s21  ;;  %p3298_p1 = scmp.lt.s32.totalorder %s4336_s10, %s3296_s24 }
  0x1f   : > { %v269_v7 = vmul.f32 0.0, %v2649_v5  ;;  %v270_v8 = vmul.f32 0.0, %v2650_v6  ;;  %v232_v22 = vld [vmem:[%s3469_s13 + $0x40] sm:$0xff]   ;;  %v234_v23 = vld [vmem:[%s3469_s13 + $0x48] sm:$0xff]   ;;  %v236_v24 = vld [vmem:[%s3469_s13 + $0x50] sm:$0xff]   ;;  %3088 = vmatpush3.bf16.msra.mxu1 %v3240_v37  ;;  %p3299_p2 = scmp.lt.s32.totalorder %s3297_s26, %s3291_s21 }
  0x20   : > { %2866 = vmatpush3.bf16.msra.mxu0 %v3217_v2  ;;  %v238_v25 = vld [vmem:[%s3469_s13 + $0x58] sm:$0xff]   ;;  %v240_v26 = vld [vmem:[%s3469_s13 + $0x60] sm:$0xff]   ;;  %v242_v27 = vld [vmem:[%s3469_s13 + $0x68] sm:$0xff]   ;;  %3083 = vmatprep.subr.bf16.mxu1 %v3241_v38  ;;  %p3293_p13 = pnand %p3292_p12, %p3440_p4 }
  0x21   : > { %2867 = vmatprep.subr.bf16.mxu0 %v3218_v3  ;;  %v271_v10 = vpack.c.bf16 %v270_v8, %v269_v7  ;;  %v244_v28 = vld [vmem:[%s3469_s13 + $0x70] sm:$0xff]   ;;  %v2735_v29 = vld [vmem:[%s3469_s13 + $0x78] sm:$0xff]   ;;  %p3300_p3 = por %p3299_p2, %p3298_p1 }
  0x22   : > { %v246_v30 = vld [vmem:[%s3469_s13 + $0x78] sm:$0xff]   ;;  %v2653_v31 = vunpack.c.l.bf16 %v2735_v29  ;;  %v2654_v32 = vunpack.c.h.bf16 %v2735_v29  ;;  %p3294_p0 = pneg %p3293_p13 }
  0x23   : > { %2877 = vmatprep.mubr.bf16.mxu0 %v271_v10  ;;  %3089 = vmatpush3.bf16.msra.mxu1 %v3241_v38 }
  0x24   : > { %2868 = vmatpush3.bf16.msra.mxu0 %v3218_v3  ;;  %v280_v33 = vmul.f32 0.0, %v2653_v31  ;;  %v281_v34 = vmul.f32 0.0, %v2654_v32  ;;  %p3301_p5 = pnand %p3300_p3, %p3294_p0 }
  0x25   : > { %2869 = vmatprep.subr.bf16.mxu0 %v3219_v9 }
  0x26   : > { %v282_v35 = vpack.c.bf16 %v281_v34, %v280_v33 }
  0x28   : > { %2870 = vmatpush3.bf16.msra.mxu0 %v3219_v9 }
  0x29   : > { %2871 = vmatprep.subr.bf16.mxu0 %v3220_v11 }
  0x2c   : > { %2872 = vmatpush3.bf16.msra.mxu0 %v3220_v11 }
  0x2d   : > { %2873 = vmatprep.subr.bf16.mxu0 %v3221_v12 }
  0x30   : > { %2874 = vmatpush3.bf16.msra.mxu0 %v3221_v12 }
  0x31   : > { %2875 = vmatprep.subr.bf16.mxu0 %v3222_v13 }
  0x34   : > { %2876 = vmatpush3.bf16.msra.mxu0 %v3222_v13 }
  0x35   : > { %2913 = vmatprep.subr.bf16.mxu0 %v3239_v36 }
  0x37   : > { %2878 = vmatmul.mubr.bf16.vlgmr.msra.gmra.mrb[0].mxu0 %v216_v14 }
  0x38   : > { %2881 = vmatprep.mubr.bf16.mxu0 %v218_v15  ;;  %2914 = vmatpush3.bf16.msra.mxu0 %v3239_v36 }
  0x39   : > { %2915 = vmatprep.subr.bf16.mxu0 %v3240_v37 }
  0x3c   : > { %2916 = vmatpush3.bf16.msra.mxu0 %v3240_v37 }
  0x3d   : > { %2917 = vmatprep.subr.bf16.mxu0 %v3241_v38 }
  0x3f   : > { %2882 = vmatmul.mubr.bf16.gmra.mrb[4].mxu0 %v220_v16 }
  0x40   : > { %2885 = vmatprep.mubr.bf16.mxu0 %v222_v17  ;;  %2918 = vmatpush3.bf16.msra.mxu0 %v3241_v38 }
  0x47   : > { %2886 = vmatmul.mubr.bf16.gmra.mrb[8].mxu0 %v224_v18 }
  0x48   : > { %2889 = vmatprep.mubr.bf16.mxu0 %v226_v19 }
  0x4f   : > { %2890 = vmatmul.mubr.bf16.gmra.mrb[12].mxu0 %v228_v20 }
  0x50   : > { %2893 = vmatprep.mubr.bf16.mxu0 %v230_v21 }
  0x57   : > { %2894 = vmatmul.mubr.bf16.gmra.mrb[16].mxu0 %v232_v22 }
  0x58   : > { %2897 = vmatprep.mubr.bf16.mxu0 %v234_v23 }
  0x5f   : > { %2898 = vmatmul.mubr.bf16.gmra.mrb[20].mxu0 %v236_v24 }
  0x60   : > { %2901 = vmatprep.mubr.bf16.mxu0 %v238_v25 }
  0x67   : > { %2902 = vmatmul.mubr.bf16.gmra.mrb[24].mxu0 %v240_v26 }
  0x68   : > { %2905 = vmatprep.mubr.bf16.mxu0 %v242_v27 }
  0x6f   : > { %2906 = vmatmul.mubr.bf16.gmra.mrb[28].mxu0 %v244_v28 }
  0x70   : > { %2909 = vmatprep.mubr.bf16.mxu0 %v246_v30 }
  0x77   : > { %2910 = vmatmul.mubr.bf16.gmra.mrb[32].mxu0 %v282_v35 }
 0x10a   : > { %v2879_v42 = vpop.f32.mrb[0].mxu0 }
 0x10b   : > { %v3518_v43 = vmax.f32 %v2879_v42, 0.0  ;;  %v477_v44 = vpop.f32.mrb[1].mxu0 }
 0x10c   : > { %v3520_v45 = vmax.f32 %v477_v44, 0.0  ;;  %v2880_v46 = vpop.f32.mrb[2].mxu0 }
 0x10d   : > { %v3522_v47 = vmax.f32 %v2880_v46, 0.0  ;;  %v480_v48 = vpop.f32.mrb[3].mxu0  ;;  %v680_v49 = vrot.slane %v3518_v43, 7  ;;  %v813_v50 = vrot.slane %v3518_v43, 1 }
 0x10e   : > { %v3529_v51 = vmax.f32 %v480_v48, 0.0  ;;  %v679_v52 = vrot.slane %v3520_v45, 7  ;;  %v812_v56 = vrot.slane %v3520_v45, 1 }
 0x10f   : > { %v698_v53 = vrot.slane %v3522_v47, 7  ;;  %v831_v54 = vrot.slane %v3522_v47, 1  ;;  %v4437_v40 = vpack.c.bf16 %v3522_v47, %v3518_v43 }
 0x110   : > { %v697_v57 = vrot.slane %v3529_v51, 7  ;;  %v830_v58 = vrot.slane %v3529_v51, 1 }
 0x111   : > { %v3544_v60 = vsel %vm848_vm2, %v813_v50, %v831_v54  ;;  %v868_v61 = vsel %vm848_vm2, %v831_v54, %v813_v50  ;;  %v3550_v62 = vsel %vm715_vm0, %v680_v49, %v698_v53  ;;  %v735_v63 = vsel %vm715_vm0, %v698_v53, %v680_v49  ;;  %v3242_v53 = vld [vmem:[%s4392_s2 + $0x48] sm:$0xff]  }
 0x112   : > { %4416 = vst [vmem:[#allocation5_spill] sm:$0xff] %v3550_v62  ;;  %v2883_v0 = vpop.f32.mrb[4].mxu0  ;;  %v3556_v1 = vsel %vm848_vm2, %v812_v56, %v830_v58  ;;  %v867_v2 = vsel %vm848_vm2, %v830_v58, %v812_v56  ;;  %v3562_v3 = vsel %vm811_vm1, 0.0, %v868_v61  ;;  %v3566_v4 = vsel %vm715_vm0, %v679_v52, %v697_v57  ;;  %3084 = vmatprep.subr.bf16.mxu1 %v3242_v53 }
 0x113   : > { %4417 = vst [vmem:[#allocation6_spill] sm:$0xff] %v3566_v4  ;;  %v3568_v5 = vmax.f32 %v2883_v0, 0.0  ;;  %v493_v6 = vpop.f32.mrb[5].mxu0  ;;  %v3572_v7 = vsel %vm811_vm1, 0.0, %v867_v2  ;;  %v734_v9 = vsel %vm715_vm0, %v697_v57, %v679_v52  ;;  %v3588_v14 = vsel %vm677_vm3, 0.0, %v735_v63  ;;  %2919 = vmatprep.subr.bf16.mxu0 %v3242_v53  ;;  %3090 = vmatpush3.bf16.msra.mxu1 %v3242_v53 }
 0x114   : > { %v3578_v10 = vmax.f32 %v493_v6, 0.0  ;;  %v2884_v11 = vpop.f32.mrb[6].mxu0  ;;  %v3584_v13 = vsel %vm677_vm3, 0.0, %v734_v9  ;;  %4419 = vst [vmem:[#allocation8_spill] sm:$0xff] %v3588_v14  ;;  %2920 = vmatpush3.bf16.msra.mxu0 %v3242_v53 }
 0x115   : > { %4418 = vst [vmem:[#allocation7_spill] sm:$0xff] %v3584_v13  ;;  %v3590_v15 = vmax.f32 %v2884_v11, 0.0  ;;  %v496_v16 = vpop.f32.mrb[7].mxu0  ;;  %v682_v18 = vrot.slane %v3568_v5, 7  ;;  %v815_v19 = vrot.slane %v3568_v5, 1 }
 0x116   : > { %v3596_v20 = vmax.f32 %v496_v16, 0.0  ;;  %v681_v22 = vrot.slane %v3578_v10, 7  ;;  %v814_v26 = vrot.slane %v3578_v10, 1 }
 0x117   : > { %v700_v23 = vrot.slane %v3590_v15, 7  ;;  %v833_v24 = vrot.slane %v3590_v15, 1  ;;  %v4441_v43 = vpack.c.bf16 %v3590_v15, %v3568_v5 }
 0x118   : > { %v699_v27 = vrot.slane %v3596_v20, 7  ;;  %v832_v28 = vrot.slane %v3596_v20, 1 }
 0x119   : > { %v3612_v30 = vsel %vm848_vm2, %v815_v19, %v833_v24  ;;  %v870_v31 = vsel %vm848_vm2, %v833_v24, %v815_v19  ;;  %v3618_v32 = vsel %vm715_vm0, %v682_v18, %v700_v23  ;;  %v737_v33 = vsel %vm715_vm0, %v700_v23, %v682_v18  ;;  %v3243_v19 = vld [vmem:[%s4392_s2 + $0x50] sm:$0xff]  }
 0x11a   : > { %4420 = vst [vmem:[#allocation9_spill] sm:$0xff] %v3618_v32  ;;  %v2887_v34 = vpop.f32.mrb[8].mxu0  ;;  %v3624_v35 = vsel %vm848_vm2, %v814_v26, %v832_v28  ;;  %v869_v36 = vsel %vm848_vm2, %v832_v28, %v814_v26  ;;  %v3630_v37 = vsel %vm811_vm1, 0.0, %v870_v31  ;;  %v3634_v38 = vsel %vm715_vm0, %v681_v22, %v699_v27  ;;  %3085 = vmatprep.subr.bf16.mxu1 %v3243_v19 }
 0x11b   : > { %4421 = vst [vmem:[#allocation10_spill] sm:$0xff] %v3634_v38  ;;  %v3636_v39 = vmax.f32 %v2887_v34, 0.0  ;;  %v509_v42 = vpop.f32.mrb[9].mxu0  ;;  %v3640_v44 = vsel %vm811_vm1, 0.0, %v869_v36  ;;  %v736_v48 = vsel %vm715_vm0, %v699_v27, %v681_v22  ;;  %v3659_v56 = vsel %vm677_vm3, 0.0, %v737_v33  ;;  %2921 = vmatprep.subr.bf16.mxu0 %v3243_v19  ;;  %3091 = vmatpush3.bf16.msra.mxu1 %v3243_v19 }
 0x11c   : > { %v3646_v49 = vmax.f32 %v509_v42, 0.0  ;;  %v2888_v50 = vpop.f32.mrb[10].mxu0  ;;  %v3655_v54 = vsel %vm677_vm3, 0.0, %v736_v48  ;;  %4423 = vst [vmem:[#allocation12_spill] sm:$0xff] %v3659_v56  ;;  %2922 = vmatpush3.bf16.msra.mxu0 %v3243_v19 }
 0x11d   : > { %4422 = vst [vmem:[#allocation11_spill] sm:$0xff] %v3655_v54  ;;  %v3661_v57 = vmax.f32 %v2888_v50, 0.0  ;;  %v512_v58 = vpop.f32.mrb[11].mxu0  ;;  %v684_v63 = vrot.slane %v3636_v39, 7  ;;  %v817_v0 = vrot.slane %v3636_v39, 1 }
 0x11e   : > { %v3667_v2 = vmax.f32 %v512_v58, 0.0  ;;  %v683_v9 = vrot.slane %v3646_v49, 7  ;;  %v816_v22 = vrot.slane %v3646_v49, 1 }
 0x11f   : > { %v702_v11 = vrot.slane %v3661_v57, 7  ;;  %v835_v16 = vrot.slane %v3661_v57, 1 }
 0x120   : > { %v701_v23 = vrot.slane %v3667_v2, 7  ;;  %v834_v24 = vrot.slane %v3667_v2, 1  ;;  %v4442_v47 = vpack.c.bf16 %v3667_v2, %v3646_v49  ;;  %v3246_v49 = vld [vmem:[%s4392_s2 + $0x8] sm:$0xff]  }
 0x121   : > { %v3686_v27 = vsel %vm848_vm2, %v817_v0, %v835_v16  ;;  %v872_v28 = vsel %vm848_vm2, %v835_v16, %v817_v0  ;;  %v3692_v31 = vsel %vm715_vm0, %v684_v63, %v702_v11 }
 0x122   : > { %4424 = vst [vmem:[#allocation13_spill] sm:$0xff] %v3692_v31  ;;  %v2891_v33 = vpop.f32.mrb[12].mxu0  ;;  %v3696_v34 = vsel %vm848_vm2, %v816_v22, %v834_v24  ;;  %v871_v36 = vsel %vm848_vm2, %v834_v24, %v816_v22  ;;  %v3702_v42 = vsel %vm811_vm1, 0.0, %v872_v28  ;;  %v3706_v48 = vsel %vm715_vm0, %v683_v9, %v701_v23 }
 0x123   : > { %4425 = vst [vmem:[#allocation14_spill] sm:$0xff] %v3706_v48  ;;  %v634_v50 = vmax.f32 %v2891_v33, 0.0  ;;  %v525_v53 = vpop.f32.mrb[13].mxu0  ;;  %v3710_v58 = vsel %vm811_vm1, 0.0, %v871_v36  ;;  %v738_v16 = vsel %vm715_vm0, %v701_v23, %v683_v9  ;;  %v739_v36 = vsel %vm715_vm0, %v702_v11, %v684_v63  ;;  %v3244_v9 = vld [vmem:[%s4392_s2 + $0x58] sm:$0xff]  }
 0x124   : > { %v3716_v22 = vmax.f32 %v525_v53, 0.0  ;;  %v2892_v24 = vpop.f32.mrb[14].mxu0  ;;  %v3722_v33 = vsel %vm677_vm3, 0.0, %v738_v16  ;;  %v3736_v16 = vsel %vm677_vm3, 0.0, %v739_v36  ;;  %3086 = vmatprep.subr.bf16.mxu1 %v3244_v9  ;;  %2923 = vmatprep.subr.bf16.mxu0 %v3244_v9 }
 0x125   : > { %4426 = vst [vmem:[#allocation15_spill] sm:$0xff] %v3722_v33  ;;  %v686_v6 = vrot.slane %v634_v50, 7  ;;  %v635_v61 = vmax.f32 %v2892_v24, 0.0  ;;  %v528_v21 = vpop.f32.mrb[15].mxu0  ;;  %v819_v23 = vrot.slane %v634_v50, 1  ;;  %4427 = vst [vmem:[#allocation16_spill] sm:$0xff] %v3736_v16  ;;  %3092 = vmatpush3.bf16.msra.mxu1 %v3244_v9  ;;  %2924 = vmatpush3.bf16.msra.mxu0 %v3244_v9 }
 0x126   : > { %v685_v53 = vrot.slane %v3716_v22, 7  ;;  %v3732_v17 = vmax.f32 %v528_v21, 0.0  ;;  %v818_v18 = vrot.slane %v3716_v22, 1  ;;  %v3759_v9 = vld [vmem:[%s4392_s2] sm:$0xff]  }
 0x127   : > { %v704_v63 = vrot.slane %v635_v61, 7  ;;  %v837_v11 = vrot.slane %v635_v61, 1  ;;  %v663_v24 = vpack.c.bf16 %v635_v61, %v634_v50  ;;  %2957 = vmatprep.subr.bf16.mxu1 %v3759_v9 }
 0x128   : > { %v703_v19 = vrot.slane %v3732_v17, 7  ;;  %v836_v28 = vrot.slane %v3732_v17, 1  ;;  %v4446_v5 = vpack.c.bf16 %v3732_v17, %v3716_v22 }
 0x129   : > { %975 = vrot.lane.b32.xlu0 %v663_v24, %s3371_s5  ;;  %v856_v61 = vsel %vm848_vm2, %v819_v23, %v837_v11  ;;  %v874_v50 = vsel %vm848_vm2, %v837_v11, %v819_v23  ;;  %v3752_v36 = vsel %vm715_vm0, %v686_v6, %v704_v63  ;;  %v741_v0 = vsel %vm715_vm0, %v704_v63, %v686_v6 }
 0x12a   : > { %v2895_v21 = vpop.f32.mrb[16].mxu0  ;;  %v904_v24 = vsel %vm811_vm1, 0.0, %v874_v50  ;;  %v3765_v46 = vsel %vm848_vm2, %v818_v18, %v836_v28  ;;  %v873_v23 = vsel %vm848_vm2, %v836_v28, %v818_v18  ;;  %v3771_v11 = vsel %vm677_vm3, 0.0, %v741_v0 }
 0x12b   : > { %v638_v6 = vmax.f32 %v2895_v21, 0.0  ;;  %v541_v63 = vpop.f32.mrb[17].mxu0  ;;  %v932_v26 = vpack.c.bf16 %v904_v24, %v856_v61  ;;  %v3775_v25 = vsel %vm811_vm1, 0.0, %v873_v23  ;;  %v3784_v0 = vsel %vm715_vm0, %v685_v53, %v703_v19 }
 0x12c   : > { %v636_v52 = vmax.f32 %v541_v63, 0.0  ;;  %v2896_v8 = vpop.f32.mrb[18].mxu0  ;;  %4428 = vst [vmem:[#allocation17_spill] sm:$0xff] %v3784_v0  ;;  %v740_v28 = vsel %vm715_vm0, %v703_v19, %v685_v53  ;;  %v4449_v17 = vpack.c.bf16 %v3752_v36, %v3771_v11 }
 0x12d   : > { %v639_v21 = vmax.f32 %v2896_v8, 0.0  ;;  %1029 = vrot.lane.b32.xlu1 %v932_v26, %s3372_s8  ;;  %v544_v61 = vpop.f32.mrb[19].mxu0  ;;  %v3791_v24 = vsel %vm677_vm3, 0.0, %v740_v28  ;;  %v688_v23 = vrot.slane %v638_v6, 7  ;;  %v821_v63 = vrot.slane %v638_v6, 1 }
 0x12e   : > { %4429 = vst [vmem:[#allocation18_spill] sm:$0xff] %v3791_v24  ;;  %v637_v50 = vmax.f32 %v544_v61, 0.0  ;;  %v687_v29 = vrot.slane %v636_v52, 7  ;;  %v820_v19 = vrot.slane %v636_v52, 1 }
 0x12f   : > { %v706_v55 = vrot.slane %v639_v21, 7  ;;  %v839_v12 = vrot.slane %v639_v21, 1  ;;  %v665_v59 = vpack.c.bf16 %v639_v21, %v638_v6 }
 0x130   : > { %v705_v8 = vrot.slane %v637_v50, 7  ;;  %v838_v53 = vrot.slane %v637_v50, 1  ;;  %v664_v16 = vpack.c.bf16 %v637_v50, %v636_v52 }
 0x131   : > { %v858_v26 = vsel %vm848_vm2, %v821_v63, %v839_v12  ;;  %v876_v28 = vsel %vm848_vm2, %v839_v12, %v821_v63  ;;  %v3801_v61 = vsel %vm715_vm0, %v688_v23, %v706_v55  ;;  %v743_v18 = vsel %vm715_vm0, %v706_v55, %v688_v23 }
 0x132   : > { %977 = vrot.lane.b32.xlu0 %v664_v16, %s3371_s5  ;;  %v2899_v6 = vpop.f32.mrb[20].mxu0  ;;  %v857_v21 = vsel %vm848_vm2, %v820_v19, %v838_v53  ;;  %v875_v52 = vsel %vm848_vm2, %v838_v53, %v820_v19  ;;  %v908_v50 = vsel %vm811_vm1, 0.0, %v876_v28  ;;  %v3814_v12 = vsel %vm715_vm0, %v687_v29, %v705_v8 }
 0x133   : > { %v642_v63 = vmax.f32 %v2899_v6, 0.0  ;;  %v557_v24 = vpop.f32.mrb[21].mxu0  ;;  %v906_v55 = vsel %vm811_vm1, 0.0, %v875_v52  ;;  %v934_v16 = vpack.c.bf16 %v908_v50, %v858_v26  ;;  %v742_v23 = vsel %vm715_vm0, %v705_v8, %v687_v29 }
 0x134   : > { %v640_v0 = vmax.f32 %v557_v24, 0.0  ;;  %v2900_v31 = vpop.f32.mrb[22].mxu0  ;;  %v933_v33 = vpack.c.bf16 %v906_v55, %v857_v21  ;;  %v3822_v19 = vsel %vm677_vm3, 0.0, %v742_v23  ;;  %v3826_v53 = vsel %vm677_vm3, 0.0, %v743_v18 }
 0x135   : > { %v643_v28 = vmax.f32 %v2900_v31, 0.0  ;;  %v560_v6 = vpop.f32.mrb[23].mxu0  ;;  %v690_v26 = vrot.slane %v642_v63, 7  ;;  %v823_v50 = vrot.slane %v642_v63, 1  ;;  %v4451_v2 = vpack.c.bf16 %v3801_v61, %v3826_v53 }
 0x136   : > { %v641_v48 = vmax.f32 %v560_v6, 0.0  ;;  %1031 = vrot.lane.b32.xlu1 %v933_v33, %s3372_s8  ;;  %979 = vrot.lane.b32.xlu0 %v665_v59, %s3371_s5  ;;  %v689_v24 = vrot.slane %v640_v0, 7  ;;  %v822_v55 = vrot.slane %v640_v0, 1 }
 0x137   : > { %v708_v8 = vrot.slane %v643_v28, 7  ;;  %v841_v21 = vrot.slane %v643_v28, 1  ;;  %v667_v18 = vpack.c.bf16 %v643_v28, %v642_v63 }
 0x138   : > { %v707_v31 = vrot.slane %v641_v48, 7  ;;  %v840_v23 = vrot.slane %v641_v48, 1  ;;  %v666_v56 = vpack.c.bf16 %v641_v48, %v640_v0 }
 0x139   : > { %v860_v52 = vsel %vm848_vm2, %v823_v50, %v841_v21  ;;  %v878_v6 = vsel %vm848_vm2, %v841_v21, %v823_v50  ;;  %v3840_v59 = vsel %vm715_vm0, %v690_v26, %v708_v8  ;;  %v745_v33 = vsel %vm715_vm0, %v708_v8, %v690_v26 }
 0x13a   : > { %1033 = vrot.lane.b32.xlu0 %v934_v16, %s3372_s8  ;;  %981 = vrot.lane.b32.xlu1 %v666_v56, %s3371_s5  ;;  %v2903_v63 = vpop.f32.mrb[24].mxu0  ;;  %v859_v48 = vsel %vm848_vm2, %v822_v55, %v840_v23  ;;  %v877_v0 = vsel %vm848_vm2, %v840_v23, %v822_v55  ;;  %v912_v28 = vsel %vm811_vm1, 0.0, %v878_v6  ;;  %v3854_v50 = vsel %vm715_vm0, %v689_v24, %v707_v31 }
 0x13b   : > { %v646_v21 = vmax.f32 %v2903_v63, 0.0  ;;  %v573_v26 = vpop.f32.mrb[25].mxu0  ;;  %v910_v16 = vsel %vm811_vm1, 0.0, %v877_v0  ;;  %v936_v56 = vpack.c.bf16 %v912_v28, %v860_v52  ;;  %v744_v8 = vsel %vm715_vm0, %v707_v31, %v689_v24 }
 0x13c   : > { %v644_v29 = vmax.f32 %v573_v26, 0.0  ;;  %v2904_v32 = vpop.f32.mrb[26].mxu0  ;;  %v935_v54 = vpack.c.bf16 %v910_v16, %v859_v48  ;;  %v3862_v55 = vsel %vm677_vm3, 0.0, %v744_v8  ;;  %v3866_v23 = vsel %vm677_vm3, 0.0, %v745_v33 }
 0x13d   : > { %4430 = vst [vmem:[#allocation19_spill] sm:$0xff] %v3866_v23  ;;  %v647_v6 = vmax.f32 %v2904_v32, 0.0  ;;  %v576_v63 = vpop.f32.mrb[27].mxu0  ;;  %v692_v52 = vrot.slane %v646_v21, 7  ;;  %v825_v28 = vrot.slane %v646_v21, 1  ;;  %v4452_v36 = vpack.c.bf16 %v3854_v50, %v3862_v55 }
 0x13e   : > { %v645_v38 = vmax.f32 %v576_v63, 0.0  ;;  %983 = vrot.lane.b32.xlu0 %v667_v18, %s3371_s5  ;;  %1035 = vrot.lane.b32.xlu1 %v935_v54, %s3372_s8  ;;  %v691_v31 = vrot.slane %v644_v29, 7  ;;  %v824_v16 = vrot.slane %v644_v29, 1 }
 0x13f   : > { %v710_v48 = vrot.slane %v647_v6, 7  ;;  %v843_v26 = vrot.slane %v647_v6, 1  ;;  %v669_v33 = vpack.c.bf16 %v647_v6, %v646_v21 }
 0x140   : > { %v709_v32 = vrot.slane %v645_v38, 7  ;;  %v842_v8 = vrot.slane %v645_v38, 1  ;;  %v668_v14 = vpack.c.bf16 %v645_v38, %v644_v29 }
 0x141   : > { %v862_v0 = vsel %vm848_vm2, %v825_v28, %v843_v26  ;;  %v880_v63 = vsel %vm848_vm2, %v843_v26, %v825_v28  ;;  %v3880_v54 = vsel %vm715_vm0, %v692_v52, %v710_v48  ;;  %v747_v18 = vsel %vm715_vm0, %v710_v48, %v692_v52 }
 0x142   : > { %4431 = vst [vmem:[#allocation20_spill] sm:$0xff] %v3880_v54  ;;  %1037 = vrot.lane.b32.xlu0 %v936_v56, %s3372_s8  ;;  %985 = vrot.lane.b32.xlu1 %v668_v14, %s3371_s5  ;;  %v2907_v21 = vpop.f32.mrb[28].mxu0  ;;  %v861_v38 = vsel %vm848_vm2, %v824_v16, %v842_v8  ;;  %v879_v29 = vsel %vm848_vm2, %v842_v8, %v824_v16  ;;  %v916_v6 = vsel %vm811_vm1, 0.0, %v880_v63  ;;  %v3906_v8 = vsel %vm677_vm3, 0.0, %v747_v18 }
 0x143   : > { %v3894_v28 = vsel %vm715_vm0, %v691_v31, %v709_v32  ;;  %v650_v26 = vmax.f32 %v2907_v21, 0.0  ;;  %v589_v52 = vpop.f32.mrb[29].mxu0  ;;  %v914_v56 = vsel %vm811_vm1, 0.0, %v879_v29  ;;  %v938_v14 = vpack.c.bf16 %v916_v6, %v862_v0  ;;  %4434 = vst [vmem:[#allocation23_spill] sm:$0xff] %v3906_v8 }
 0x144   : > { %4432 = vst [vmem:[#allocation21_spill] sm:$0xff] %v3894_v28  ;;  %v746_v48 = vsel %vm715_vm0, %v709_v32, %v691_v31  ;;  %v648_v24 = vmax.f32 %v589_v52, 0.0  ;;  %v2908_v62 = vpop.f32.mrb[30].mxu0  ;;  %v937_v13 = vpack.c.bf16 %v914_v56, %v861_v38  ;;  %v4453_v53 = vld [vmem:[#allocation19_spill] sm:$0xff] }
 0x145   : > { %v3902_v16 = vsel %vm677_vm3, 0.0, %v746_v48  ;;  %v651_v63 = vmax.f32 %v2908_v62, 0.0  ;;  %v592_v21 = vpop.f32.mrb[31].mxu0  ;;  %v694_v0 = vrot.slane %v650_v26, 7  ;;  %v827_v6 = vrot.slane %v650_v26, 1 }
 0x146   : > { %4433 = vst [vmem:[#allocation22_spill] sm:$0xff] %v3902_v16  ;;  %v649_v4 = vmax.f32 %v592_v21, 0.0  ;;  %987 = vrot.lane.b32.xlu0 %v669_v33, %s3371_s5  ;;  %1039 = vrot.lane.b32.xlu1 %v937_v13, %s3372_s8  ;;  %v693_v32 = vrot.slane %v648_v24, 7  ;;  %v826_v56 = vrot.slane %v648_v24, 1 }
 0x147   : > { %v712_v38 = vrot.slane %v651_v63, 7  ;;  %v845_v52 = vrot.slane %v651_v63, 1  ;;  %v671_v18 = vpack.c.bf16 %v651_v63, %v650_v26 }
 0x148   : > { %v711_v62 = vrot.slane %v649_v4, 7  ;;  %v844_v48 = vrot.slane %v649_v4, 1  ;;  %v670_v23 = vpack.c.bf16 %v649_v4, %v648_v24 }
 0x149   : > { %v864_v29 = vsel %vm848_vm2, %v827_v6, %v845_v52  ;;  %v882_v21 = vsel %vm848_vm2, %v845_v52, %v827_v6  ;;  %v3920_v13 = vsel %vm715_vm0, %v694_v0, %v712_v38  ;;  %v749_v33 = vsel %vm715_vm0, %v712_v38, %v694_v0 }
 0x14a   : > { %1041 = vrot.lane.b32.xlu0 %v938_v14, %s3372_s8  ;;  %989 = vrot.lane.b32.xlu1 %v670_v23, %s3371_s5  ;;  %v2911_v26 = vpop.f32.mrb[32].mxu0  ;;  %v863_v4 = vsel %vm848_vm2, %v826_v56, %v844_v48  ;;  %v881_v24 = vsel %vm848_vm2, %v844_v48, %v826_v56  ;;  %v920_v63 = vsel %vm811_vm1, 0.0, %v882_v21  ;;  %v3934_v6 = vsel %vm715_vm0, %v693_v32, %v711_v62 }
 0x14b   : > { %v654_v52 = vmax.f32 %v2911_v26, 0.0  ;;  %v605_v0 = vpop.f32.mrb[33].mxu0  ;;  %v918_v14 = vsel %vm811_vm1, 0.0, %v881_v24  ;;  %v940_v23 = vpack.c.bf16 %v920_v63, %v864_v29  ;;  %v748_v38 = vsel %vm715_vm0, %v711_v62, %v693_v32 }
 0x14c   : > { %v652_v31 = vmax.f32 %v605_v0, 0.0  ;;  %v2912_v8 = vpop.f32.mrb[34].mxu0  ;;  %v939_v54 = vpack.c.bf16 %v918_v14, %v863_v4  ;;  %v3942_v56 = vsel %vm677_vm3, 0.0, %v748_v38  ;;  %v3946_v48 = vsel %vm677_vm3, 0.0, %v749_v33 }
 0x14d   : > { %v655_v21 = vmax.f32 %v2912_v8, 0.0  ;;  %v608_v26 = vpop.f32.mrb[35].mxu0  ;;  %v696_v29 = vrot.slane %v654_v52, 7  ;;  %v829_v63 = vrot.slane %v654_v52, 1  ;;  %v807_v32 = vpack.c.bf16 %v3920_v13, %v3946_v48  ;;  %v4462_v13 = vld [vmem:[#allocation6_spill] sm:$0xff]  ;;  %v4463_v48 = vld [vmem:[#allocation7_spill] sm:$0xff] }
 0x14e   : > { %v653_v16 = vmax.f32 %v608_v26, 0.0  ;;  %991 = vrot.lane.b32.xlu0 %v671_v18, %s3371_s5  ;;  %1043 = vrot.lane.b32.xlu1 %v939_v54, %s3372_s8  ;;  %v695_v62 = vrot.slane %v652_v31, 7  ;;  %v828_v14 = vrot.slane %v652_v31, 1 }
 0x14f   : > { %v714_v4 = vrot.slane %v655_v21, 7  ;;  %v847_v0 = vrot.slane %v655_v21, 1  ;;  %v673_v33 = vpack.c.bf16 %v655_v21, %v654_v52 }
 0x150   : > { %v713_v8 = vrot.slane %v653_v16, 7  ;;  %v846_v38 = vrot.slane %v653_v16, 1  ;;  %v672_v28 = vpack.c.bf16 %v653_v16, %v652_v31 }
 0x151   : > { %v866_v24 = vsel %vm848_vm2, %v829_v63, %v847_v0  ;;  %v884_v26 = vsel %vm848_vm2, %v847_v0, %v829_v63  ;;  %v3960_v54 = vsel %vm715_vm0, %v696_v29, %v714_v4  ;;  %v751_v18 = vsel %vm715_vm0, %v714_v4, %v696_v29 }
 0x152   : > { %1045 = vrot.lane.b32.xlu0 %v940_v23, %s3372_s8  ;;  %993 = vrot.lane.b32.xlu1 %v672_v28, %s3371_s5  ;;  %v865_v16 = vsel %vm848_vm2, %v828_v14, %v846_v38  ;;  %v883_v31 = vsel %vm848_vm2, %v846_v38, %v828_v14  ;;  %v924_v52 = vsel %vm811_vm1, 0.0, %v884_v26  ;;  %v3974_v21 = vsel %vm715_vm0, %v695_v62, %v713_v8  ;;  %v3249_v26 = vld [vmem:[%s4392_s2 + $0x20] sm:$0xff]  }
 0x153   : > { %v922_v29 = vsel %vm811_vm1, 0.0, %v883_v31  ;;  %v942_v63 = vpack.c.bf16 %v924_v52, %v866_v24  ;;  %v750_v28 = vsel %vm715_vm0, %v713_v8, %v695_v62  ;;  %v3982_v23 = vsel %vm677_vm3, 0.0, %v751_v18  ;;  %v4456_v31 = vld [vmem:[#allocation22_spill] sm:$0xff] }
 0x154   : > { %v941_v4 = vpack.c.bf16 %v922_v29, %v865_v16  ;;  %v3986_v0 = vsel %vm677_vm3, 0.0, %v750_v28  ;;  %v809_v14 = vpack.c.bf16 %v3960_v54, %v3982_v23  ;;  %v4435_v24 = vpack.c.bf16 %v3529_v51, %v3520_v45  ;;  %v4455_v16 = vld [vmem:[#allocation21_spill] sm:$0xff]  ;;  %v3250_v28 = vld [vmem:[%s4392_s2 + $0x28] sm:$0xff]  }
 0x155   : > { %v808_v41 = vpack.c.bf16 %v3974_v21, %v3986_v0  ;;  %v4436_v62 = vpack.c.bf16 %v3572_v7, %v3556_v1  ;;  %v4438_v8 = vpack.c.bf16 %v3596_v20, %v3578_v10  ;;  %v4439_v45 = vpack.c.bf16 %v3562_v3, %v3544_v60  ;;  %v4465_v21 = vld [vmem:[#allocation5_spill] sm:$0xff]  ;;  %v4466_v0 = vld [vmem:[#allocation8_spill] sm:$0xff] }
 0x156   : > { %961 = vrot.lane.b32.xlu0 %v4435_v24, %s3371_s5  ;;  %1047 = vrot.lane.b32.xlu1 %v941_v4, %s3372_s8  ;;  %v4440_v51 = vpack.c.bf16 %v3640_v44, %v3624_v35  ;;  %v4443_v60 = vpack.c.bf16 %v3630_v37, %v3612_v30  ;;  %v4444_v1 = vpack.c.bf16 %v3710_v58, %v3696_v34  ;;  %v3247_v58 = vld [vmem:[%s4392_s2 + $0x10] sm:$0xff]   ;;  %v4458_v24 = vld [vmem:[#allocation20_spill] sm:$0xff] }
 0x157   : > { %v4445_v3 = vpack.c.bf16 %v3661_v57, %v3636_v39  ;;  %v4447_v7 = vpack.c.bf16 %v3702_v42, %v3686_v27  ;;  %v4448_v10 = vpack.c.bf16 %v3775_v25, %v3765_v46  ;;  %v4450_v37 = vpack.c.bf16 %v3814_v12, %v3822_v19  ;;  %v3248_v12 = vld [vmem:[%s4392_s2 + $0x18] sm:$0xff]  }
 0x158   : > { %v4457_v52 = vpack.c.bf16 %v4455_v16, %v4456_v31 }
 0x15a   : > { %1015 = vrot.lane.b32.xlu0 %v4436_v62, %s3372_s8  ;;  %963 = vrot.lane.b32.xlu1 %v4437_v40, %s3371_s5  ;;  %v4459_v62 = vld [vmem:[#allocation23_spill] sm:$0xff] }
 0x15b   : > { %v4460_v40 = vpack.c.bf16 %v4458_v24, %v4459_v62 }
 0x15e   : > { %965 = vrot.lane.b32.xlu0 %v4438_v8, %s3371_s5  ;;  %1017 = vrot.lane.b32.xlu1 %v4439_v45, %s3372_s8 }
 0x162   : > { %1019 = vrot.lane.b32.xlu0 %v4440_v51, %s3372_s8  ;;  %967 = vrot.lane.b32.xlu1 %v4441_v43, %s3371_s5  ;;  %v3251_v43 = vld [vmem:[%s4392_s2 + $0x60] sm:$0xff]  }
 0x166   : > { %969 = vrot.lane.b32.xlu0 %v4442_v47, %s3371_s5  ;;  %1021 = vrot.lane.b32.xlu1 %v4443_v60, %s3372_s8  ;;  %v4461_v60 = vpack.c.bf16 %v3934_v6, %v3942_v56 }
 0x16a   : > { %1023 = vrot.lane.b32.xlu0 %v4444_v1, %s3372_s8  ;;  %971 = vrot.lane.b32.xlu1 %v4445_v3, %s3371_s5 }
 0x16e   : > { %973 = vrot.lane.b32.xlu0 %v4446_v5, %s3371_s5  ;;  %1025 = vrot.lane.b32.xlu1 %v4447_v7, %s3372_s8 }
 0x172   : > { %995 = vrot.lane.b32.xlu0 %v673_v33, %s3371_s5  ;;  %1027 = vrot.lane.b32.xlu1 %v4448_v10, %s3372_s8  ;;  %v4454_v33 = vpack.c.bf16 %v3840_v59, %v4453_v53  ;;  %v3253_v53 = vld [vmem:[%s4392_s2 + $0x70] sm:$0xff]  }
 0x176   : > { %1049 = vrot.lane.b32.xlu1 %v942_v63, %s3372_s8 }
 0x19b   : > { %v976_v15 = vpop.permute.xlu0 %975 }
 0x19c   : > { %v1075_v20 = vsel %vm1051_vm4, %v4449_v17, %v976_v15 }
 0x19f   : > { %v1030_v30 = vpop.permute.xlu1 %1029 }
 0x1a0   : > { %v4056_v35 = vsel %vm1106_vm5, %v1075_v20, %v1030_v30 }
 0x1a1   : > { %2937 = vmatprep.mubr.msk.bf16.mxu1 %vm1204_vm6, %v4056_v35 }
 0x1a4   : > { %v978_v25 = vpop.permute.xlu0 %977 }
 0x1a5   : > { %v1078_v39 = vsel %vm1051_vm4, %v4450_v37, %v978_v25 }
 0x1a8   : > { %v1032_v44 = vpop.permute.xlu1 %1031  ;;  %v980_v46 = vpop.permute.xlu0 %979 }
 0x1a9   : > { %v4068_v57 = vsel %vm1106_vm5, %v1078_v39, %v1032_v44  ;;  %v1081_v27 = vsel %vm1051_vm4, %v4451_v2, %v980_v46 }
 0x1aa   : > { %2938 = vmatmul.mubr.msk.bf16.vlgmr.msra.gmra.mrb[0].mxu1 %vm1204_vm6, %v4068_v57 }
 0x1ab   : > { %2958 = vmatpush3.bf16.msra.mxu1 %v3759_v9 }
 0x1ac   : > { %v1034_v34 = vpop.permute.xlu0 %1033  ;;  %v982_v42 = vpop.permute.xlu1 %981  ;;  %2959 = vmatprep.subr.bf16.mxu1 %v3246_v49 }
 0x1ad   : > { %v4081_v22 = vsel %vm1106_vm5, %v1081_v27, %v1034_v34  ;;  %v1084_v9 = vsel %vm1051_vm4, %v4452_v36, %v982_v42  ;;  %v3252_v34 = vld [vmem:[%s4392_s2 + $0x68] sm:$0xff]   ;;  %v4469_v36 = vld [vmem:[#allocation11_spill] sm:$0xff] }
 0x1ae   : > { %2941 = vmatprep.mubr.msk.bf16.mxu1 %vm1204_vm6, %v4081_v22 }
 0x1af   : > { %2960 = vmatpush3.bf16.msra.mxu1 %v3246_v49 }
 0x1b0   : > { %v984_v11 = vpop.permute.xlu0 %983  ;;  %v1036_v61 = vpop.permute.xlu1 %1035  ;;  %2961 = vmatprep.subr.bf16.mxu1 %v3247_v58 }
 0x1b1   : > { %v4093_v19 = vsel %vm1106_vm5, %v1084_v9, %v1036_v61  ;;  %v1087_v50 = vsel %vm1051_vm4, %v4454_v33, %v984_v11 }
 0x1b2   : > { %2942 = vmatmul.mubr.msk.bf16.gmra.mrb[4].mxu1 %vm1204_vm6, %v4093_v19 }
 0x1b3   : > { %2962 = vmatpush3.bf16.msra.mxu1 %v3247_v58  ;;  %v4468_v58 = vld [vmem:[#allocation10_spill] sm:$0xff] }
 0x1b4   : > { %v1038_v55 = vpop.permute.xlu0 %1037  ;;  %v986_v38 = vpop.permute.xlu1 %985  ;;  %2963 = vmatprep.subr.bf16.mxu1 %v3248_v12  ;;  %v4470_v9 = vpack.c.bf16 %v4468_v58, %v4469_v36 }
 0x1b5   : > { %v4105_v18 = vsel %vm1106_vm5, %v1087_v50, %v1038_v55  ;;  %v1090_v59 = vsel %vm1051_vm4, %v4457_v52, %v986_v38  ;;  %v4471_v50 = vld [vmem:[#allocation9_spill] sm:$0xff]  ;;  %v4472_v55 = vld [vmem:[#allocation12_spill] sm:$0xff] }
 0x1b6   : > { %2945 = vmatprep.mubr.msk.bf16.mxu1 %vm1204_vm6, %v4105_v18  ;;  %v4473_v38 = vpack.c.bf16 %v4471_v50, %v4472_v55  ;;  %v3254_v52 = vld [vmem:[%s4392_s2 + $0x78] sm:$0xff]  }
 0x1b7   : > { %2964 = vmatpush3.bf16.msra.mxu1 %v3248_v12 }
 0x1b8   : > { %v988_v29 = vpop.permute.xlu0 %987  ;;  %v1040_v63 = vpop.permute.xlu1 %1039  ;;  %2965 = vmatprep.subr.bf16.mxu1 %v3249_v26 }
 0x1b9   : > { %v4117_v4 = vsel %vm1106_vm5, %v1090_v59, %v1040_v63  ;;  %v1093_v8 = vsel %vm1051_vm4, %v4460_v40, %v988_v29  ;;  %v4474_v29 = vld [vmem:[#allocation14_spill] sm:$0xff]  ;;  %v4475_v63 = vld [vmem:[#allocation15_spill] sm:$0xff] }
 0x1ba   : > { %2946 = vmatmul.mubr.msk.bf16.gmra.mrb[8].mxu1 %vm1204_vm6, %v4117_v4 }
 0x1bb   : > { %2966 = vmatpush3.bf16.msra.mxu1 %v3249_v26 }
 0x1bc   : > { %v1042_v45 = vpop.permute.xlu0 %1041  ;;  %v990_v51 = vpop.permute.xlu1 %989  ;;  %2967 = vmatprep.subr.bf16.mxu1 %v3250_v28 }
 0x1bd   : > { %v4129_v47 = vsel %vm1106_vm5, %v1093_v8, %v1042_v45  ;;  %v1096_v1 = vsel %vm1051_vm4, %v4461_v60, %v990_v51  ;;  %v3255_v8 = vld [vmem:[%s4392_s2 + $0x80] sm:$0xff]  }
 0x1be   : > { %2949 = vmatprep.mubr.msk.bf16.mxu1 %vm1204_vm6, %v4129_v47  ;;  %v4477_v51 = vld [vmem:[#allocation13_spill] sm:$0xff] }
 0x1bf   : > { %2968 = vmatpush3.bf16.msra.mxu1 %v3250_v28  ;;  %v4476_v28 = vpack.c.bf16 %v4474_v29, %v4475_v63 }
 0x1c0   : > { %v992_v3 = vpop.permute.xlu0 %991  ;;  %v1044_v5 = vpop.permute.xlu1 %1043  ;;  %3001 = vmatprep.subr.bf16.mxu1 %v3251_v43 }
 0x1c1   : > { %v4138_v7 = vsel %vm1106_vm5, %v1096_v1, %v1044_v5  ;;  %v1099_v10 = vsel %vm1051_vm4, %v807_v32, %v992_v3  ;;  %v4464_v32 = vpack.c.bf16 %v4462_v13, %v4463_v48  ;;  %v3256_v5 = vld [vmem:[%s4392_s2 + $0x88] sm:$0xff]  }
 0x1c2   : > { %2950 = vmatmul.mubr.msk.bf16.gmra.mrb[12].mxu1 %vm1204_vm6, %v4138_v7 }
 0x1c4   : > { %v1046_v15 = vpop.permute.xlu0 %1045  ;;  %v994_v17 = vpop.permute.xlu1 %993 }
 0x1c5   : > { %v4147_v6 = vsel %vm1106_vm5, %v1099_v10, %v1046_v15  ;;  %v1102_v56 = vsel %vm1051_vm4, %v808_v41, %v994_v17  ;;  %v4467_v41 = vpack.c.bf16 %v4465_v21, %v4466_v0  ;;  %v4480_v17 = vld [vmem:[#allocation17_spill] sm:$0xff] }
 0x1c6   : > { %2953 = vmatprep.mubr.msk.bf16.mxu1 %vm1204_vm6, %v4147_v6 }
 0x1c8   : > { %v962_v20 = vpop.permute.xlu0 %961  ;;  %v1048_v30 = vpop.permute.xlu1 %1047 }
 0x1c9   : > { %v4156_v25 = vsel %vm1106_vm5, %v1102_v56, %v1048_v30  ;;  %v1054_v37 = vsel %vm1051_vm4, %v4464_v32, %v962_v20  ;;  %v4481_v56 = vld [vmem:[#allocation18_spill] sm:$0xff] }
 0x1ca   : > { %2954 = vmatmul.mubr.msk.bf16.gmra.mrb[16].mxu1 %vm1204_vm6, %v4156_v25  ;;  %v4482_v20 = vpack.c.bf16 %v4480_v17, %v4481_v56 }
 0x1cc   : > { %v1016_v39 = vpop.permute.xlu0 %1015  ;;  %v964_v44 = vpop.permute.xlu1 %963 }
 0x1cd   : > { %v1108_v46 = vsel %vm1106_vm5, %v1054_v37, %v1016_v39  ;;  %v1057_v49 = vsel %vm1051_vm4, %v4467_v41, %v964_v44 }
 0x1ce   : > { %2969 = vmatprep.mubr.msk.bf16.mxu1 %vm1204_vm6, %v1108_v46 }
 0x1d0   : > { %v966_v2 = vpop.permute.xlu0 %965  ;;  %v1018_v27 = vpop.permute.xlu1 %1017 }
 0x1d1   : > { %v1110_v42 = vsel %vm1106_vm5, %v1057_v49, %v1018_v27  ;;  %v1060_v11 = vsel %vm1051_vm4, %v4470_v9, %v966_v2 }
 0x1d2   : > { %2925 = vmatprep.mubr.msk.bf16.mxu0 %vm1204_vm6, %v1110_v42  ;;  %2970 = vmatmul.mubr.msk.bf16.vlgmr.msra.gmra.mrb[20].mxu1 %vm1204_vm6, %v1110_v42 }
 0x1d3   : > { %3002 = vmatpush3.bf16.msra.mxu1 %v3251_v43  ;;  %v4478_v43 = vld [vmem:[#allocation16_spill] sm:$0xff] }
 0x1d4   : > { %v1020_v61 = vpop.permute.xlu0 %1019  ;;  %v968_v12 = vpop.permute.xlu1 %967  ;;  %3003 = vmatprep.subr.bf16.mxu1 %v3252_v34  ;;  %v4479_v60 = vpack.c.bf16 %v4477_v51, %v4478_v43 }
 0x1d5   : > { %v1112_v33 = vsel %vm1106_vm5, %v1060_v11, %v1020_v61  ;;  %v1063_v26 = vsel %vm1051_vm4, %v4473_v38, %v968_v12 }
 0x1d6   : > { %2926 = vmatmul.mubr.msk.bf16.vlgmr.msra.gmra.mrb[36].mxu0 %vm1204_vm6, %v1112_v33  ;;  %2973 = vmatprep.mubr.msk.bf16.mxu1 %vm1204_vm6, %v1112_v33 }
 0x1d7   : > { %3004 = vmatpush3.bf16.msra.mxu1 %v3252_v34 }
 0x1d8   : > { %v970_v16 = vpop.permute.xlu0 %969  ;;  %v1022_v31 = vpop.permute.xlu1 %1021  ;;  %3005 = vmatprep.subr.bf16.mxu1 %v3253_v53 }
 0x1d9   : > { %v1114_v59 = vsel %vm1106_vm5, %v1063_v26, %v1022_v31  ;;  %v1066_v24 = vsel %vm1051_vm4, %v4476_v28, %v970_v16 }
 0x1da   : > { %2929 = vmatprep.mubr.msk.bf16.mxu0 %vm1204_vm6, %v1114_v59  ;;  %2974 = vmatmul.mubr.msk.bf16.gmra.mrb[24].mxu1 %vm1204_vm6, %v1114_v59 }
 0x1db   : > { %3006 = vmatpush3.bf16.msra.mxu1 %v3253_v53 }
 0x1dc   : > { %v1024_v62 = vpop.permute.xlu0 %1023  ;;  %v972_v40 = vpop.permute.xlu1 %971  ;;  %3007 = vmatprep.subr.bf16.mxu1 %v3254_v52 }
 0x1dd   : > { %v1116_v45 = vsel %vm1106_vm5, %v1066_v24, %v1024_v62  ;;  %v1069_v1 = vsel %vm1051_vm4, %v4479_v60, %v972_v40 }
 0x1de   : > { %2930 = vmatmul.mubr.msk.bf16.gmra.mrb[40].mxu0 %vm1204_vm6, %v1116_v45  ;;  %2977 = vmatprep.mubr.msk.bf16.mxu1 %vm1204_vm6, %v1116_v45 }
 0x1df   : > { %3008 = vmatpush3.bf16.msra.mxu1 %v3254_v52 }
 0x1e0   : > { %v1026_v3 = vpop.permute.xlu1 %1025  ;;  %3009 = vmatprep.subr.bf16.mxu1 %v3255_v8  ;;  %v974_v10 = vpop.permute.xlu0 %973 }
 0x1e1   : > { %v1118_v15 = vsel %vm1106_vm5, %v1069_v1, %v1026_v3  ;;  %v1072_v30 = vsel %vm1051_vm4, %v4482_v20, %v974_v10 }
 0x1e2   : > { %2933 = vmatprep.mubr.msk.bf16.mxu0 %vm1204_vm6, %v1118_v15  ;;  %2978 = vmatmul.mubr.msk.bf16.gmra.mrb[28].mxu1 %vm1204_vm6, %v1118_v15 }
 0x1e3   : > { %3010 = vmatpush3.bf16.msra.mxu1 %v3255_v8 }
 0x1e4   : > { %v1028_v13 = vpop.permute.xlu1 %1027  ;;  %3011 = vmatprep.subr.bf16.mxu1 %v3256_v5 }
 0x1e5   : > { %v1120_v48 = vsel %vm1106_vm5, %v1072_v30, %v1028_v13 }
 0x1e6   : > { %2934 = vmatmul.mubr.msk.bf16.gmra.mrb[44].mxu0 %vm1204_vm6, %v1120_v48  ;;  %2981 = vmatprep.mubr.msk.bf16.mxu1 %vm1204_vm6, %v1120_v48 }
 0x1e7   : > { %3012 = vmatpush3.bf16.msra.mxu1 %v3256_v5 }
 0x1ea   : > { %2982 = vmatmul.mubr.msk.bf16.gmra.mrb[0].mxu1 %vm1204_vm6, %v4056_v35 }
 0x1eb   : > { %2985 = vmatprep.mubr.msk.bf16.mxu1 %vm1204_vm6, %v4068_v57 }
 0x1f2   : > { %2986 = vmatmul.mubr.msk.bf16.gmra.mrb[4].mxu1 %vm1204_vm6, %v4081_v22 }
 0x1f3   : > { %2989 = vmatprep.mubr.msk.bf16.mxu1 %vm1204_vm6, %v4093_v19 }
 0x1fa   : > { %2990 = vmatmul.mubr.msk.bf16.gmra.mrb[8].mxu1 %vm1204_vm6, %v4105_v18 }
 0x1fb   : > { %2993 = vmatprep.mubr.msk.bf16.mxu1 %vm1204_vm6, %v4117_v4 }
 0x202   : > { %2994 = vmatmul.mubr.msk.bf16.gmra.mrb[12].mxu1 %vm1204_vm6, %v4129_v47 }
 0x203   : > { %2997 = vmatprep.mubr.msk.bf16.mxu1 %vm1204_vm6, %v4138_v7 }
 0x20a   : > { %2998 = vmatmul.mubr.msk.bf16.gmra.mrb[16].mxu1 %vm1204_vm6, %v4147_v6 }
 0x20b   : > { %3013 = vmatprep.mubr.msk.bf16.mxu1 %vm1204_vm6, %v1112_v33 }
 0x212   : > { %3014 = vmatmul.mubr.msk.bf16.vlgmr.msra.gmra.mrb[20].mxu1 %vm1204_vm6, %v1114_v59 }
 0x213   : > { %3017 = vmatprep.mubr.msk.bf16.mxu1 %vm1204_vm6, %v1116_v45 }
 0x21a   : > { %3018 = vmatmul.mubr.msk.bf16.gmra.mrb[24].mxu1 %vm1204_vm6, %v1118_v15 }
 0x21b   : > { %3021 = vmatprep.mubr.msk.bf16.mxu1 %vm1204_vm6, %v1120_v48 }
 0x222   : > { %3022 = vmatmul.mubr.msk.bf16.gmra.mrb[28].mxu1 %vm1204_vm6, %v4056_v35  ;;  %v3257_v35 = vld [vmem:[%s4393_s3] sm:$0xff]  }
 0x223   : > { %3025 = vmatprep.mubr.msk.bf16.mxu1 %vm1204_vm6, %v4068_v57  ;;  %v3258_v57 = vld [vmem:[%s4393_s3 + $0x8] sm:$0xff]   ;;  %3045 = vmatprep.subr.bf16.mxu0 %v3257_v35 }
 0x224   : > { %3046 = vmatpush3.bf16.msra.mxu0 %v3257_v35 }
 0x225   : > { %3047 = vmatprep.subr.bf16.mxu0 %v3258_v57 }
 0x228   : > { %3048 = vmatpush3.bf16.msra.mxu0 %v3258_v57 }
 0x22a   : > { %3026 = vmatmul.mubr.msk.bf16.gmra.mrb[0].mxu1 %vm1204_vm6, %v4081_v22  ;;  %v996_v22 = vpop.permute.xlu0 %995 }
 0x22b   : > { %3029 = vmatprep.mubr.msk.bf16.mxu1 %vm1204_vm6, %v4093_v19  ;;  %v1050_v19 = vpop.permute.xlu1 %1049 }
 0x232   : > { %3030 = vmatmul.mubr.msk.bf16.gmra.mrb[4].mxu1 %vm1204_vm6, %v4105_v18  ;;  %v1105_v18 = vsel %vm1051_vm4, %v809_v14, %v996_v22 }
 0x233   : > { %3033 = vmatprep.mubr.msk.bf16.mxu1 %vm1204_vm6, %v4117_v4  ;;  %v1142_v4 = vsel %vm1106_vm5, %v1105_v18, %v1050_v19 }
 0x23a   : > { %3034 = vmatmul.mubr.msk.bf16.gmra.mrb[8].mxu1 %vm1204_vm6, %v4129_v47 }
 0x23b   : > { %3037 = vmatprep.mubr.msk.bf16.mxu1 %vm1204_vm6, %v4138_v7 }
 0x242   : > { %3038 = vmatmul.mubr.msk.bf16.gmra.mrb[12].mxu1 %vm1204_vm6, %v4147_v6 }
 0x243   : > { %3041 = vmatprep.mubr.msk.bf16.mxu1 %vm1204_vm6, %v4156_v25 }
 0x24a   : > { %3042 = vmatmul.mubr.msk.bf16.gmra.mrb[16].mxu1 %vm1204_vm6, %v1142_v4 }
 0x2a9   : > { %v2927_v47 = vpop.f32.mrb[36].mxu0 }
 0x2aa   : > { %v1271_v7 = vpop.f32.mrb[37].mxu0 }
 0x2ab   : > { %v2928_v32 = vpop.f32.mrb[38].mxu0 }
 0x2ac   : > { %v1274_v37 = vpop.f32.mrb[39].mxu0 }
 0x2b1   : > { %v2931_v6 = vpop.f32.mrb[40].mxu0 }
 0x2b2   : > { %v1287_v39 = vpop.f32.mrb[41].mxu0 }
 0x2b3   : > { %v2932_v44 = vpop.f32.mrb[42].mxu0 }
 0x2b4   : > { %v1290_v25 = vpop.f32.mrb[43].mxu0 }
 0x2b9   : > { %v2935_v46 = vpop.f32.mrb[44].mxu0 }
 0x2ba   : > { %v1303_v21 = vpop.f32.mrb[45].mxu0 }
 0x2bb   : > { %v2936_v0 = vpop.f32.mrb[46].mxu0 }
 0x2bc   : > { %v1306_v41 = vpop.f32.mrb[47].mxu0 }
 0x2e5   : > { %v3015_v49 = vpop.f32.mrb[20].mxu1 }
 0x2e6   : > { %v3093_v54 = vadd.f32 %v3015_v49, %v2927_v47  ;;  %v1682_v23 = vpop.f32.mrb[21].mxu1 }
 0x2e7   : > { %v3094_v14 = vadd.f32 %v1682_v23, %v1271_v7  ;;  %v3016_v2 = vpop.f32.mrb[22].mxu1 }
 0x2e8   : > { %v3095_v27 = vadd.f32 %v3016_v2, %v2928_v32  ;;  %v1685_v34 = vpop.f32.mrb[23].mxu1  ;;  %v1843_v58 = vmax.f32 %v3093_v54, 0.0 }
 0x2e9   : > { %v3096_v42 = vadd.f32 %v1685_v34, %v1274_v37  ;;  %v1841_v9 = vmax.f32 %v3094_v14, 0.0 }
 0x2ea   : > { %v1844_v36 = vmax.f32 %v3095_v27, 0.0 }
 0x2eb   : > { %v1842_v11 = vmax.f32 %v3096_v42, 0.0 }
 0x2ec   : > { %v1906_v61 = vpack.c.bf16 %v1844_v36, %v1843_v58 }
 0x2ed   : > { %v1905_v12 = vpack.c.bf16 %v1842_v11, %v1841_v9  ;;  %v3019_v53 = vpop.f32.mrb[24].mxu1 }
 0x2ee   : > { %v3097_v33 = vadd.f32 %v3019_v53, %v2931_v6  ;;  %v1698_v50 = vpop.f32.mrb[25].mxu1 }
 0x2ef   : > { %v3098_v55 = vadd.f32 %v1698_v50, %v1287_v39  ;;  %v3020_v38 = vpop.f32.mrb[26].mxu1  ;;  %3049 = vmatprep.mubr.msk.bf16.mxu0 %vm1051_vm4, %v1905_v12 }
 0x2f0   : > { %v3099_v26 = vadd.f32 %v3020_v38, %v2932_v44  ;;  %v1701_v16 = vpop.f32.mrb[27].mxu1  ;;  %3050 = vmatmul.mubr.msk.bf16.vlgmr.msra.gmra.mrb[48].mxu0 %vm1051_vm4, %v1906_v61  ;;  %v1847_v52 = vmax.f32 %v3097_v33, 0.0 }
 0x2f1   : > { %v3100_v31 = vadd.f32 %v1701_v16, %v1290_v25  ;;  %v1845_v29 = vmax.f32 %v3098_v55, 0.0 }
 0x2f2   : > { %v1848_v59 = vmax.f32 %v3099_v26, 0.0 }
 0x2f3   : > { %v1846_v63 = vmax.f32 %v3100_v31, 0.0 }
 0x2f4   : > { %v1908_v28 = vpack.c.bf16 %v1848_v59, %v1847_v52 }
 0x2f5   : > { %v1907_v24 = vpack.c.bf16 %v1846_v63, %v1845_v29  ;;  %v3023_v62 = vpop.f32.mrb[28].mxu1 }
 0x2f6   : > { %v3101_v40 = vadd.f32 %v3023_v62, %v2935_v46  ;;  %v1714_v8 = vpop.f32.mrb[29].mxu1  ;;  %v3275_v62 = vld [vmem:[%s3469_s13 + $0x8] sm:$0xff]  }
 0x2f7   : > { %v3102_v45 = vadd.f32 %v1714_v8, %v1303_v21  ;;  %v3024_v51 = vpop.f32.mrb[30].mxu1  ;;  %3053 = vmatprep.mubr.msk.bf16.mxu0 %vm1051_vm4, %v1907_v24  ;;  %v3276_v8 = vld [vmem:[%s3469_s13] sm:$0xff]  }
 0x2f8   : > { %v3103_v43 = vadd.f32 %v3024_v51, %v2936_v0  ;;  %v1717_v60 = vpop.f32.mrb[31].mxu1  ;;  %3054 = vmatmul.mubr.msk.bf16.gmra.mrb[52].mxu0 %vm1051_vm4, %v1908_v28  ;;  %v1851_v3 = vmax.f32 %v3101_v40, 0.0  ;;  %v1875_v40 = vunpack.c.l.bf16 %v3275_v62  ;;  %v1876_v51 = vunpack.c.h.bf16 %v3275_v62 }
 0x2f9   : > { %v3104_v1 = vadd.f32 %v1717_v60, %v1306_v41  ;;  %v1849_v10 = vmax.f32 %v3102_v45, 0.0  ;;  %v1873_v45 = vunpack.c.l.bf16 %v3276_v8  ;;  %v1874_v60 = vunpack.c.h.bf16 %v3276_v8 }
 0x2fa   : > { %v1852_v5 = vmax.f32 %v3103_v43, 0.0 }
 0x2fb   : > { %v1850_v15 = vmax.f32 %v3104_v1, 0.0 }
 0x2fc   : > { %v1910_v17 = vpack.c.bf16 %v1852_v5, %v1851_v3 }
 0x2fd   : > { %v1909_v56 = vpack.c.bf16 %v1850_v15, %v1849_v10  ;;  %v3027_v20 = vpop.f32.mrb[0].mxu1 }
 0x2fe   : > { %v1730_v30 = vpop.f32.mrb[1].mxu1  ;;  %v1855_v48 = vmax.f32 %v3027_v20, 0.0 }
 0x2ff   : > { %v3028_v13 = vpop.f32.mrb[2].mxu1  ;;  %3057 = vmatprep.mubr.msk.bf16.mxu0 %vm1051_vm4, %v1909_v56  ;;  %v1853_v22 = vmax.f32 %v1730_v30, 0.0 }
 0x300   : > { %v1856_v35 = vmax.f32 %v3028_v13, 0.0  ;;  %v1733_v57 = vpop.f32.mrb[3].mxu1  ;;  %3058 = vmatmul.mubr.msk.bf16.gmra.mrb[56].mxu0 %vm1051_vm4, %v1910_v17  ;;  %v3277_v13 = vld [vmem:[%s3469_s13 + $0x18] sm:$0xff]  }
 0x301   : > { %v1854_v19 = vmax.f32 %v1733_v57, 0.0 }
 0x302   : > { %v1912_v18 = vpack.c.bf16 %v1856_v35, %v1855_v48  ;;  %v1879_v48 = vunpack.c.l.bf16 %v3277_v13 }
 0x303   : > { %v1911_v4 = vpack.c.bf16 %v1854_v19, %v1853_v22  ;;  %v3278_v22 = vld [vmem:[%s3469_s13 + $0x10] sm:$0xff]  }
 0x304   : > { %v1877_v19 = vunpack.c.l.bf16 %v3278_v22 }
 0x305   : > { %v3031_v47 = vpop.f32.mrb[4].mxu1  ;;  %3061 = vmatprep.mubr.msk.bf16.mxu0 %vm1051_vm4, %v1911_v4  ;;  %v1880_v4 = vunpack.c.h.bf16 %v3277_v13  ;;  %v3284_v13 = vld [vmem:[%s3469_s13 + $0x40] sm:$0xff]  }
 0x306   : > { %v1746_v7 = vpop.f32.mrb[5].mxu1  ;;  %v1859_v37 = vmax.f32 %v3031_v47, 0.0 }
 0x307   : > { %v3032_v32 = vpop.f32.mrb[6].mxu1  ;;  %v1857_v44 = vmax.f32 %v1746_v7, 0.0 }
 0x308   : > { %v1860_v6 = vmax.f32 %v3032_v32, 0.0  ;;  %v1749_v39 = vpop.f32.mrb[7].mxu1  ;;  %3062 = vmatmul.mubr.msk.bf16.gmra.mrb[60].mxu0 %vm1051_vm4, %v1912_v18  ;;  %v1878_v32 = vunpack.c.h.bf16 %v3278_v22 }
 0x309   : > { %v1858_v25 = vmax.f32 %v1749_v39, 0.0 }
 0x30a   : > { %v1914_v46 = vpack.c.bf16 %v1860_v6, %v1859_v37 }
 0x30b   : > { %v1913_v21 = vpack.c.bf16 %v1858_v25, %v1857_v44 }
 0x30d   : > { %v3035_v0 = vpop.f32.mrb[8].mxu1  ;;  %3065 = vmatprep.mubr.msk.bf16.mxu0 %vm1051_vm4, %v1913_v21 }
 0x30e   : > { %v1762_v41 = vpop.f32.mrb[9].mxu1  ;;  %v1863_v54 = vmax.f32 %v3035_v0, 0.0 }
 0x30f   : > { %v3036_v49 = vpop.f32.mrb[10].mxu1  ;;  %v1861_v2 = vmax.f32 %v1762_v41, 0.0 }
 0x310   : > { %v1864_v23 = vmax.f32 %v3036_v49, 0.0  ;;  %v1765_v14 = vpop.f32.mrb[11].mxu1  ;;  %3066 = vmatmul.mubr.msk.bf16.gmra.mrb[64].mxu0 %vm1051_vm4, %v1914_v46  ;;  %v3279_v49 = vld [vmem:[%s3469_s13 + $0x28] sm:$0xff]  }
 0x311   : > { %v1862_v27 = vmax.f32 %v1765_v14, 0.0 }
 0x312   : > { %v1916_v34 = vpack.c.bf16 %v1864_v23, %v1863_v54  ;;  %v1883_v54 = vunpack.c.l.bf16 %v3279_v49 }
 0x313   : > { %v1915_v42 = vpack.c.bf16 %v1862_v27, %v1861_v2  ;;  %v3280_v2 = vld [vmem:[%s3469_s13 + $0x20] sm:$0xff]  }
 0x314   : > { %v1881_v27 = vunpack.c.l.bf16 %v3280_v2 }
 0x315   : > { %v3039_v58 = vpop.f32.mrb[12].mxu1  ;;  %3069 = vmatprep.mubr.msk.bf16.mxu0 %vm1051_vm4, %v1915_v42  ;;  %v1884_v42 = vunpack.c.h.bf16 %v3279_v49  ;;  %v3286_v49 = vld [vmem:[%s3469_s13 + $0x50] sm:$0xff]  }
 0x316   : > { %v1778_v36 = vpop.f32.mrb[13].mxu1  ;;  %v1867_v11 = vmax.f32 %v3039_v58, 0.0 }
 0x317   : > { %v3040_v9 = vpop.f32.mrb[14].mxu1  ;;  %v1865_v53 = vmax.f32 %v1778_v36, 0.0 }
 0x318   : > { %v1868_v61 = vmax.f32 %v3040_v9, 0.0  ;;  %v1781_v12 = vpop.f32.mrb[15].mxu1  ;;  %3070 = vmatmul.mubr.msk.bf16.gmra.mrb[68].mxu0 %vm1051_vm4, %v1916_v34  ;;  %v1882_v9 = vunpack.c.h.bf16 %v3280_v2 }
 0x319   : > { %v1866_v33 = vmax.f32 %v1781_v12, 0.0 }
 0x31a   : > { %v1918_v50 = vpack.c.bf16 %v1868_v61, %v1867_v11 }
 0x31b   : > { %v1917_v55 = vpack.c.bf16 %v1866_v33, %v1865_v53 }
 0x31d   : > { %v3043_v38 = vpop.f32.mrb[16].mxu1  ;;  %3073 = vmatprep.mubr.msk.bf16.mxu0 %vm1051_vm4, %v1917_v55 }
 0x31e   : > { %v1794_v26 = vpop.f32.mrb[17].mxu1  ;;  %v1871_v31 = vmax.f32 %v3043_v38, 0.0 }
 0x31f   : > { %v3044_v16 = vpop.f32.mrb[18].mxu1  ;;  %v1869_v29 = vmax.f32 %v1794_v26, 0.0 }
 0x320   : > { %v1872_v52 = vmax.f32 %v3044_v16, 0.0  ;;  %v1797_v59 = vpop.f32.mrb[19].mxu1  ;;  %3074 = vmatmul.mubr.msk.bf16.gmra.mrb[72].mxu0 %vm1051_vm4, %v1918_v50  ;;  %v3281_v16 = vld [vmem:[%s3469_s13 + $0x38] sm:$0xff]  }
 0x321   : > { %v1870_v63 = vmax.f32 %v1797_v59, 0.0 }
 0x322   : > { %v1920_v28 = vpack.c.bf16 %v1872_v52, %v1871_v31  ;;  %v1887_v31 = vunpack.c.l.bf16 %v3281_v16 }
 0x323   : > { %v1919_v24 = vpack.c.bf16 %v1870_v63, %v1869_v29  ;;  %v3282_v29 = vld [vmem:[%s3469_s13 + $0x30] sm:$0xff]  }
 0x324   : > { %v1885_v63 = vunpack.c.l.bf16 %v3282_v29  ;;  %v1886_v8 = vunpack.c.h.bf16 %v3282_v29 }
 0x325   : > { %3077 = vmatprep.mubr.msk.bf16.mxu0 %vm1051_vm4, %v1919_v24  ;;  %v1888_v24 = vunpack.c.h.bf16 %v3281_v16  ;;  %v3288_v16 = vld [vmem:[%s3469_s13 + $0x60] sm:$0xff]  }
 0x328   : > { %3078 = vmatmul.mubr.msk.bf16.gmra.mrb[76].mxu0 %vm1051_vm4, %v1920_v28 }
 0x3c3   : > { %v3051_v43 = vpop.f32.mrb[48].mxu0 }
 0x3c4   : > { %v2028_v1 = vadd.f32 %v3051_v43, %v1875_v40  ;;  %v2019_v3 = vpop.f32.mrb[49].mxu0 }
 0x3c5   : > { %v2020_v5 = vadd.f32 %v2019_v3, %v1873_v45  ;;  %v3052_v10 = vpop.f32.mrb[50].mxu0 }
 0x3c6   : > { %v2031_v15 = vadd.f32 %v3052_v10, %v1876_v51  ;;  %v2022_v17 = vpop.f32.mrb[51].mxu0  ;;  %v2148_v20 = vmax.f32 %v2028_v1, 0.0 }
 0x3c7   : > { %v2023_v56 = vadd.f32 %v2022_v17, %v1874_v60  ;;  %v2146_v35 = vmax.f32 %v2020_v5, 0.0  ;;  %v3283_v17 = vld [vmem:[%s3469_s13 + $0x48] sm:$0xff]  }
 0x3c8   : > { %v2149_v30 = vmax.f32 %v2031_v15, 0.0 }
 0x3c9   : > { %v2147_v57 = vmax.f32 %v2023_v56, 0.0  ;;  %v1891_v56 = vunpack.c.l.bf16 %v3283_v17 }
 0x3ca   : > { %v2663_v18 = vpack.c.bf16 %v2149_v30, %v2148_v20 }
 0x3cb   : > { %v2658_v47 = vpack.c.bf16 %v2147_v57, %v2146_v35  ;;  %v3055_v7 = vpop.f32.mrb[52].mxu0  ;;  %v1892_v57 = vunpack.c.h.bf16 %v3283_v17  ;;  %v3290_v17 = vld [vmem:[%s3469_s13 + $0x70] sm:$0xff]  }
 0x3cc   : > { %2736 = vst [vmem:[%s4301_s9 + $0x8] sm:$0xff] %v2663_v18   ;;  %v2044_v37 = vadd.f32 %v3055_v7, %v1879_v48  ;;  %v2035_v6 = vpop.f32.mrb[53].mxu0  ;;  %v1889_v48 = vunpack.c.l.bf16 %v3284_v13  ;;  %v1890_v18 = vunpack.c.h.bf16 %v3284_v13 }
 0x3cd   : > { %2659 = vst [vmem:[%s4301_s9] sm:$0xff] %v2658_v47   ;;  %v2036_v39 = vadd.f32 %v2035_v6, %v1877_v19  ;;  %v3056_v44 = vpop.f32.mrb[54].mxu0 }
 0x3ce   : > { %v2047_v25 = vadd.f32 %v3056_v44, %v1880_v4  ;;  %v2038_v46 = vpop.f32.mrb[55].mxu0  ;;  %v2152_v0 = vmax.f32 %v2044_v37, 0.0 }
 0x3cf   : > { %v2039_v21 = vadd.f32 %v2038_v46, %v1878_v32  ;;  %v2150_v23 = vmax.f32 %v2036_v39, 0.0  ;;  %v3285_v46 = vld [vmem:[%s3469_s13 + $0x58] sm:$0xff]  }
 0x3d0   : > { %v2153_v41 = vmax.f32 %v2047_v25, 0.0 }
 0x3d1   : > { %v2151_v14 = vmax.f32 %v2039_v21, 0.0  ;;  %v1895_v21 = vunpack.c.l.bf16 %v3285_v46 }
 0x3d2   : > { %v2673_v34 = vpack.c.bf16 %v2153_v41, %v2152_v0 }
 0x3d3   : > { %v2668_v58 = vpack.c.bf16 %v2151_v14, %v2150_v23  ;;  %v3059_v36 = vpop.f32.mrb[56].mxu0  ;;  %v1896_v14 = vunpack.c.h.bf16 %v3285_v46 }
 0x3d4   : > { %2738 = vst [vmem:[%s4301_s9 + $0x18] sm:$0xff] %v2673_v34   ;;  %v2060_v11 = vadd.f32 %v3059_v36, %v1883_v54  ;;  %v2051_v61 = vpop.f32.mrb[57].mxu0  ;;  %v1893_v54 = vunpack.c.l.bf16 %v3286_v49  ;;  %v1894_v34 = vunpack.c.h.bf16 %v3286_v49 }
 0x3d5   : > { %2737 = vst [vmem:[%s4301_s9 + $0x10] sm:$0xff] %v2668_v58   ;;  %v2052_v12 = vadd.f32 %v2051_v61, %v1881_v27  ;;  %v3060_v53 = vpop.f32.mrb[58].mxu0 }
 0x3d6   : > { %v2063_v33 = vadd.f32 %v3060_v53, %v1884_v42  ;;  %v2054_v50 = vpop.f32.mrb[59].mxu0  ;;  %v2156_v38 = vmax.f32 %v2060_v11, 0.0 }
 0x3d7   : > { %v2055_v55 = vadd.f32 %v2054_v50, %v1882_v9  ;;  %v2154_v52 = vmax.f32 %v2052_v12, 0.0  ;;  %v3287_v50 = vld [vmem:[%s3469_s13 + $0x68] sm:$0xff]  }
 0x3d8   : > { %v2157_v26 = vmax.f32 %v2063_v33, 0.0 }
 0x3d9   : > { %v2155_v59 = vmax.f32 %v2055_v55, 0.0  ;;  %v1899_v55 = vunpack.c.l.bf16 %v3287_v50 }
 0x3da   : > { %v2683_v28 = vpack.c.bf16 %v2157_v26, %v2156_v38 }
 0x3db   : > { %v2678_v62 = vpack.c.bf16 %v2155_v59, %v2154_v52  ;;  %v3063_v40 = vpop.f32.mrb[60].mxu0  ;;  %v1900_v59 = vunpack.c.h.bf16 %v3287_v50 }
 0x3dc   : > { %2740 = vst [vmem:[%s4301_s9 + $0x28] sm:$0xff] %v2683_v28   ;;  %v2076_v45 = vadd.f32 %v3063_v40, %v1887_v31  ;;  %v2067_v51 = vpop.f32.mrb[61].mxu0  ;;  %v1897_v31 = vunpack.c.l.bf16 %v3288_v16  ;;  %v1898_v28 = vunpack.c.h.bf16 %v3288_v16 }
 0x3dd   : > { %2739 = vst [vmem:[%s4301_s9 + $0x20] sm:$0xff] %v2678_v62   ;;  %v2068_v43 = vadd.f32 %v2067_v51, %v1885_v63  ;;  %v3064_v60 = vpop.f32.mrb[62].mxu0 }
 0x3de   : > { %v2079_v1 = vadd.f32 %v3064_v60, %v1888_v24  ;;  %v2070_v3 = vpop.f32.mrb[63].mxu0  ;;  %v2160_v10 = vmax.f32 %v2076_v45, 0.0 }
 0x3df   : > { %v2071_v5 = vadd.f32 %v2070_v3, %v1886_v8  ;;  %v2158_v20 = vmax.f32 %v2068_v43, 0.0  ;;  %v3289_v3 = vld [vmem:[%s3469_s13 + $0x78] sm:$0xff]   ;;  %s2646_s13 = sshll.u32 %s3361_s18, 11  ;;  %s4342_s18 = scalar_lea.sflag [#allocation3], %s202_s6 }
 0x3e0   : > { %v2161_v15 = vmax.f32 %v2079_v1, 0.0  ;;  %s4334_s14 = scalar_lea.hbm %s4394_s4, %s2646_s13 }
 0x3e1   : > { %v2159_v30 = vmax.f32 %v2071_v5, 0.0  ;;  %v1903_v5 = vunpack.c.l.bf16 %v3289_v3 }
 0x3e2   : > { %v2693_v35 = vpack.c.bf16 %v2161_v15, %v2160_v10 }
 0x3e3   : > { %v2688_v22 = vpack.c.bf16 %v2159_v30, %v2158_v20  ;;  %v3067_v19 = vpop.f32.mrb[64].mxu0  ;;  %v1904_v30 = vunpack.c.h.bf16 %v3289_v3 }
 0x3e4   : > { %2742 = vst [vmem:[%s4301_s9 + $0x38] sm:$0xff] %v2693_v35   ;;  %v2092_v4 = vadd.f32 %v3067_v19, %v1891_v56  ;;  %v2083_v47 = vpop.f32.mrb[65].mxu0  ;;  %v1901_v56 = vunpack.c.l.bf16 %v3290_v17  ;;  %v1902_v35 = vunpack.c.h.bf16 %v3290_v17 }
 0x3e5   : > { %2741 = vst [vmem:[%s4301_s9 + $0x30] sm:$0xff] %v2688_v22   ;;  %v2084_v7 = vadd.f32 %v2083_v47, %v1889_v48  ;;  %v3068_v32 = vpop.f32.mrb[66].mxu0 }
 0x3e6   : > { %v2095_v37 = vadd.f32 %v3068_v32, %v1892_v57  ;;  %v2086_v6 = vpop.f32.mrb[67].mxu0  ;;  %v2164_v44 = vmax.f32 %v2092_v4, 0.0 }
 0x3e7   : > { %v2087_v39 = vadd.f32 %v2086_v6, %v1890_v18  ;;  %v2162_v0 = vmax.f32 %v2084_v7, 0.0 }
 0x3e8   : > { %v2165_v25 = vmax.f32 %v2095_v37, 0.0 }
 0x3e9   : > { %v2163_v41 = vmax.f32 %v2087_v39, 0.0 }
 0x3ea   : > { %v2703_v23 = vpack.c.bf16 %v2165_v25, %v2164_v44 }
 0x3eb   : > { %v2698_v2 = vpack.c.bf16 %v2163_v41, %v2162_v0  ;;  %v3071_v27 = vpop.f32.mrb[68].mxu0 }
 0x3ec   : > { %2744 = vst [vmem:[%s4301_s9 + $0x48] sm:$0xff] %v2703_v23   ;;  %v2108_v42 = vadd.f32 %v3071_v27, %v1895_v21  ;;  %v2099_v58 = vpop.f32.mrb[69].mxu0 }
 0x3ed   : > { %2743 = vst [vmem:[%s4301_s9 + $0x40] sm:$0xff] %v2698_v2   ;;  %v2100_v36 = vadd.f32 %v2099_v58, %v1893_v54  ;;  %v3072_v9 = vpop.f32.mrb[70].mxu0 }
 0x3ee   : > { %v2111_v11 = vadd.f32 %v3072_v9, %v1896_v14  ;;  %v2102_v61 = vpop.f32.mrb[71].mxu0  ;;  %v2168_v53 = vmax.f32 %v2108_v42, 0.0 }
 0x3ef   : > { %v2103_v12 = vadd.f32 %v2102_v61, %v1894_v34  ;;  %v2166_v38 = vmax.f32 %v2100_v36, 0.0 }
 0x3f0   : > { %v2169_v33 = vmax.f32 %v2111_v11, 0.0 }
 0x3f1   : > { %v2167_v26 = vmax.f32 %v2103_v12, 0.0 }
 0x3f2   : > { %v2713_v52 = vpack.c.bf16 %v2169_v33, %v2168_v53 }
 0x3f3   : > { %v2708_v29 = vpack.c.bf16 %v2167_v26, %v2166_v38  ;;  %v3075_v63 = vpop.f32.mrb[72].mxu0 }
 0x3f4   : > { %2746 = vst [vmem:[%s4301_s9 + $0x58] sm:$0xff] %v2713_v52   ;;  %v2124_v24 = vadd.f32 %v3075_v63, %v1899_v55  ;;  %v2115_v62 = vpop.f32.mrb[73].mxu0 }
 0x3f5   : > { %2745 = vst [vmem:[%s4301_s9 + $0x50] sm:$0xff] %v2708_v29   ;;  %v2116_v40 = vadd.f32 %v2115_v62, %v1897_v31  ;;  %v3076_v8 = vpop.f32.mrb[74].mxu0 }
 0x3f6   : > { %v2127_v45 = vadd.f32 %v3076_v8, %v1900_v59  ;;  %v2118_v51 = vpop.f32.mrb[75].mxu0  ;;  %v2172_v60 = vmax.f32 %v2124_v24, 0.0 }
 0x3f7   : > { %v2119_v43 = vadd.f32 %v2118_v51, %v1898_v28  ;;  %v2170_v10 = vmax.f32 %v2116_v40, 0.0 }
 0x3f8   : > { %v2173_v1 = vmax.f32 %v2127_v45, 0.0 }
 0x3f9   : > { %v2171_v15 = vmax.f32 %v2119_v43, 0.0 }
 0x3fa   : > { %v2723_v20 = vpack.c.bf16 %v2173_v1, %v2172_v60 }
 0x3fb   : > { %v2718_v13 = vpack.c.bf16 %v2171_v15, %v2170_v10  ;;  %v3079_v48 = vpop.f32.mrb[76].mxu0 }
 0x3fc   : > { %2748 = vst [vmem:[%s4301_s9 + $0x68] sm:$0xff] %v2723_v20   ;;  %v2140_v57 = vadd.f32 %v3079_v48, %v1903_v5  ;;  %v2131_v22 = vpop.f32.mrb[77].mxu0 }
 0x3fd   : > { %2747 = vst [vmem:[%s4301_s9 + $0x60] sm:$0xff] %v2718_v13   ;;  %v2132_v19 = vadd.f32 %v2131_v22, %v1901_v56  ;;  %v3080_v18 = vpop.f32.mrb[78].mxu0 }
 0x3fe   : > { %v2143_v4 = vadd.f32 %v3080_v18, %v1904_v30  ;;  %v2134_v47 = vpop.f32.mrb[79].mxu0  ;;  %v2176_v32 = vmax.f32 %v2140_v57, 0.0 }
 0x3ff   : > { %v2135_v7 = vadd.f32 %v2134_v47, %v1902_v35  ;;  %v2174_v6 = vmax.f32 %v2132_v19, 0.0 }
 0x400   : > { %v2177_v37 = vmax.f32 %v2143_v4, 0.0 }
 0x401   : > { %v2175_v39 = vmax.f32 %v2135_v7, 0.0 }
 0x402   : > { %v2733_v44 = vpack.c.bf16 %v2177_v37, %v2176_v32 }
 0x403   : > { %v2728_v25 = vpack.c.bf16 %v2175_v39, %v2174_v6 }
 0x404   : > { %2750 = vst [vmem:[%s4301_s9 + $0x78] sm:$0xff] %v2733_v44  }
 0x405   : > { %2749 = vst [vmem:[%s4301_s9 + $0x70] sm:$0xff] %v2728_v25  }
 0x406   : > { %3304 = shalt.err (!%p3301_p5)
}
 0x407   : > { %s3305_s29 = scalar_lea.hbm %s4334_s14, 2048  ;;  %s3309_s6 = scalar_lea.hbm %s4394_s4, 4096 }
 0x408   : > { %p3306_p6 = scmp.ne.s32.totalorder %s4334_s14, %s3305_s29  ;;  %p3310_p10 = scmp.lt.u32.totalorder %s4334_s14, %s4394_s4 }
 0x409   : > { %p3311_p11 = scmp.lt.u32.totalorder %s3309_s6, %s3305_s29  ;;  %p3313_p13 = scmp.lt.u32.totalorder %s3305_s29, %s4334_s14 }
 0x40a   : > { %p3307_p7 = pnand %p3306_p6, %p3440_p4 }
 0x40b   : > { %p3312_p12 = por %p3311_p11, %p3310_p10 }
 0x40c   : > { %p3308_p9 = pneg %p3307_p7 }
 0x40d   : > { %p3314_p0 = por %p3313_p13, %p3312_p12 }
 0x40f   : > { %p3315_p1 = pnand %p3314_p0, %p3308_p9 }
 0x411   : > { %3318 = shalt.err (!%p3315_p1)
}
 0x412   : > { %s3374_s13 = smov 4  }
 0x413   : > { %3157 = dma.vmem_to_hbm [thread:$0]  (%p3440_p4), %s4336_s10, 2048, %s4334_s14, %s4342_s18, %s3372_s8, %s3372_s8, %s3374_s13  }
 0x414 PF: > { %p3163_p2 = scmp.ge.s32.totalorder %s3369_s20, 2  ;;  %s2370_s11 = sand.u32 1, %s3349_s15  }
 0x415   : > { %s2371_s12 = scalar_lea.sflag [#allocation3], %s2370_s11 }
 0x416   : > { %p3160_p3 = pnand %p3163_p2, %p3447_p8 }
 0x418   : > { %3344 = dma.done.wait (!%p3160_p3), %s2371_s12, 2048  }
 0x419   : > { %3346 = vsyncadd (!%p3160_p3), %s2371_s12, 4294965248  ;;  %s17_s20 = sadd.s32 1, %s3369_s20   ;;  %s4483_s15 = smov %s3353_s16 }
 0x41a   : > { %p14_p5 = scmp.ge.s32.totalorder %s17_s20, 4   ;;  %s4484_s16 = smov %s3357_s17 }
 0x41b   : > { %s4485_s17 = smov %s3453_s28  ;;  %s4486_s18 = smov %s3365_s19 }
 0x41c   : > { %s4487_s19 = smov %s4489_s23  ;;  %16 = sbr.rel (!%p14_p5) target bundleno = 4 (0x4), region = 76 }
 0x423   :  { %2376 = vsyncpa [#allocation3], 1 }
 0x424   :  { %2378 = vsyncpa [#allocation3 + $0x1], 1 }

</bundles_post_ra>
